<compile_context>
chip_gen: v7x
topology: tpu7x:2x2x1
jax: 0.10.0
libtpu: 0.0.40
codegen_flags: <defaults>
</compile_context>

<pallas_src>
import math
import functools

import jax
import jax.numpy as jnp
from jax.experimental import pallas as pl
from jax.experimental.pallas import tpu as pltpu


# -----------------------------------------------------------------------------
# Fused encoder kernel: ONE grid step, whole problem resident in VMEM.
# -----------------------------------------------------------------------------
def _fused_encoder_kernel(x_ref, wqkv_ref, wo_ref, y_ref, *,
                          B, L, nhead, dh, num_imgs, hw, d_model,
                          pack_k, norm_scale, eps, inv_n_elem):
    D = d_model
    tdh = 2 * dh                # packed complex head width [r_h | i_h]
    BL = B * L
    SL = nhead * BL             # stacked rows, ordered (head, batch, token)

    x = x_ref[...]              # (BL, 2D) f32, cols = [xr | xi]
    wqkv = wqkv_ref[...]        # (2D, 6D) bf16, packed complex Q|K|V
    wo = wo_ref[...]            # (2D, 2D) bf16, packed complex Wo

    # ---- complex Q/K/V projection for ALL heads & batches: one MXU matmul ---
    # 1/sqrt(dh) is pre-folded into the Q columns of wqkv on the host.
    qkv = jnp.dot(x.astype(jnp.bfloat16), wqkv,
                  preferred_element_type=jnp.float32)             # (BL, 6D)
    qkv_bf = qkv.astype(jnp.bfloat16)

    # ---- stack (head, batch) along rows -> one attention matmul pair --------
    def stack(base):
        return jnp.concatenate(
            [qkv_bf[:, base + h * tdh: base + (h + 1) * tdh] for h in range(nhead)],
            axis=0)                                               # (SL, 2dh)

    q_stk = stack(0)            # rows = h*BL + b*L + l
    k_stk = stack(2 * D)
    v_stk = stack(4 * D)

    # scores[(h,b,l),(h',b',l')] = Qr Kr^T + Qi Ki^T = Re(Q K^H); only entries
    # with the same (h,b) block (contiguous L-sized diagonal blocks) are valid.
    scores = jax.lax.dot_general(
        q_stk, k_stk, (((1,), (1,)), ((), ())),
        preferred_element_type=jnp.float32)                       # (SL, SL) f32

    # Block-diagonal mask. Float block-ids (floor((i+0.5)/L)) avoid relying on
    # vector integer division in the Mosaic lowering; exact for any sane L.
    inv_L = 1.0 / float(L)
    row_b = jnp.floor(
        (jax.lax.broadcasted_iota(jnp.int32, (SL, 1), 0).astype(jnp.float32)
         + 0.5) * inv_L)
    col_b = jnp.floor(
        (jax.lax.broadcasted_iota(jnp.int32, (1, SL), 1).astype(jnp.float32)
         + 0.5) * inv_L)
    scores = jnp.where(row_b == col_b, scores, -1e30)

    # ---- masked softmax (f32 elementwise, EUP reciprocal) --------------------
    m = jnp.max(scores, axis=-1, keepdims=True)
    p = jnp.exp(scores - m)
    attn = p * pl.reciprocal(jnp.sum(p, axis=-1, keepdims=True), approx=True)

    # ---- value mix: one (SL,SL)@(SL,2dh) matmul ------------------------------
    o_stk = jnp.dot(attn.astype(jnp.bfloat16), v_stk,
                    preferred_element_type=jnp.float32)           # (SL, 2dh)

    # unstack heads back into lanes -> (BL, 2D), columns head-grouped
    o_cat = jnp.concatenate(
        [o_stk[h * BL:(h + 1) * BL, :] for h in range(nhead)], axis=1)

    # ---- complex output projection + residual --------------------------------
    s2 = jnp.dot(o_cat.astype(jnp.bfloat16), wo,
                 preferred_element_type=jnp.float32)              # (BL, 2D)
    s = x + s2                                                    # f32 residual

    # ---- InstanceL2Norm per (batch, num_img) group; real/imag separate -------
    # factor = scale * sqrt(n_elem / (sum(x^2) + eps)),  n_elem = hw*D
    s3 = s.reshape(B * num_imgs, hw, 2 * D)       # leading-dim split only
    sr = s3[..., :D]
    si = s3[..., D:]
    ssr = jnp.sum(jnp.sum(sr * sr, axis=-1, keepdims=True), axis=1, keepdims=True)
    ssi = jnp.sum(jnp.sum(si * si, axis=-1, keepdims=True), axis=1, keepdims=True)
    fr = norm_scale * jax.lax.rsqrt((ssr + eps) * inv_n_elem)     # (B*N,1,1)
    fi = norm_scale * jax.lax.rsqrt((ssi + eps) * inv_n_elem)
    y = jnp.concatenate([sr * fr, si * fi], axis=-1).reshape(BL, 2 * D)

    # ---- lane-dense store: row-chunk -> lane concat to a 128-wide slab -------
    if pack_k > 1:
        chunk = BL // pack_k
        y = jnp.concatenate(
            [y[c * chunk:(c + 1) * chunk, :] for c in range(pack_k)], axis=1)
    y_ref[...] = y


# -----------------------------------------------------------------------------
# Host-side weight packing (once per call, tiny).
# -----------------------------------------------------------------------------
def _pack_complex(wr, wi):
    # X=[xr|xi]; W=[[Wr,Wi],[-Wi,Wr]]  =>  X@W = [yr | yi]
    top = jnp.concatenate([wr, wi], axis=1)
    bot = jnp.concatenate([-wi, wr], axis=1)
    return jnp.concatenate([top, bot], axis=0)                    # (2D, 2D)


def _interleave_cols_by_head(wpk, nhead, D):
    # output columns reordered so head h owns a contiguous [r_h | i_h] slice
    dh = D // nhead
    r = wpk[:, :D].reshape(2 * D, nhead, dh)
    i = wpk[:, D:].reshape(2 * D, nhead, dh)
    return jnp.concatenate([r, i], axis=-1).reshape(2 * D, 2 * D)


def _interleave_rows_by_head(wpk, nhead, D):
    # input rows reordered to accept head-grouped [Or_h|Oi_h|...] activations
    dh = D // nhead
    r = wpk[:D].reshape(nhead, dh, 2 * D)
    i = wpk[D:].reshape(nhead, dh, 2 * D)
    return jnp.concatenate([r, i], axis=1).reshape(2 * D, 2 * D)


# -----------------------------------------------------------------------------
# Wrapper: one fused encoder call (single grid step, batch folded).
# -----------------------------------------------------------------------------
def complex_encoder_forward(x_flat, w_qkv, w_o, *, B, L, num_imgs, nhead,
                            d_model, eps=1e-5):
    D = d_model
    hw = L // num_imgs
    dh = D // nhead
    BL = B * L
    two_d = 2 * D

    # lane-dense output packing factor (k row-chunks concatenated along lanes)
    pack_k = 1
    if two_d < 128 and 128 % two_d == 0 and BL % (128 // two_d) == 0:
        pack_k = 128 // two_d
    out_rows = BL // pack_k
    out_cols = two_d * pack_k

    kernel = functools.partial(
        _fused_encoder_kernel,
        B=B, L=L, nhead=nhead, dh=dh, num_imgs=num_imgs, hw=hw, d_model=D,
        pack_k=pack_k,
        norm_scale=math.sqrt(1.0 / (D * 4 * 4)),
        eps=eps, inv_n_elem=1.0 / float(hw * D))

    y_pk = pl.pallas_call(
        kernel,
        grid=(1,),
        in_specs=[
            pl.BlockSpec((BL, two_d), lambda i: (0, 0)),
            pl.BlockSpec((two_d, 6 * D), lambda i: (0, 0)),
            pl.BlockSpec((two_d, two_d), lambda i: (0, 0)),
        ],
        out_specs=pl.BlockSpec((out_rows, out_cols), lambda i: (0, 0)),
        out_shape=jax.ShapeDtypeStruct((out_rows, out_cols), jnp.float32),
        compiler_params=pltpu.CompilerParams(
            dimension_semantics=("arbitrary",)),
    )(x_flat, w_qkv, w_o)

    if pack_k > 1:
        y_flat = jnp.concatenate(
            [y_pk[:, c * two_d:(c + 1) * two_d] for c in range(pack_k)], axis=0)
    else:
        y_flat = y_pk
    return y_flat                                                  # (BL, 2D)


def com_transformer_encoder(src_real, src_imag, params, *, nhead=4,
                            num_encoder_layers=6):
    """Matches ComTransformerEncoder.forward; returns (output_real, output_imag)
    in the torch layout (num_imgs*h*w, batch, dim)."""
    N, B, D, h, w = src_real.shape
    hw = h * w
    L = N * hw

    def to_tokens(x):
        # torch: reshape(N,B,D,hw).permute(0,3,1,2).reshape(L,B,D); batch-first.
        return (x.reshape(N, B, D, hw).transpose(0, 3, 1, 2)
                 .reshape(L, B, D).transpose(1, 0, 2))             # (B, L, D)

    xr = to_tokens(src_real)
    xi = to_tokens(src_imag)
    x_flat = jnp.concatenate([xr, xi], axis=-1).reshape(B * L, 2 * D)

    # Pack complex weights once; fold 1/sqrt(dh) into Q; Q|K|V concatenated.
    inv_sqrt_dh = 1.0 / math.sqrt(D // nhead)
    wq = _interleave_cols_by_head(
        _pack_complex(params["wq_r"] * inv_sqrt_dh,
                      params["wq_i"] * inv_sqrt_dh), nhead, D)
    wk = _interleave_cols_by_head(_pack_complex(params["wk_r"], params["wk_i"]),
                                  nhead, D)
    wv = _interleave_cols_by_head(_pack_complex(params["wv_r"], params["wv_i"]),
                                  nhead, D)
    w_qkv = jnp.concatenate([wq, wk, wv], axis=1).astype(jnp.bfloat16)  # (2D,6D)
    w_o = _interleave_rows_by_head(_pack_complex(params["wo_r"], params["wo_i"]),
                                   nhead, D).astype(jnp.bfloat16)       # (2D,2D)

    # `_get_clones` shares ONE module instance and the torch loop feeds the
    # ORIGINAL src into every layer -> one evaluation reproduces the loop.
    y_flat = complex_encoder_forward(x_flat, w_qkv, w_o,
                                     B=B, L=L, num_imgs=N, nhead=nhead,
                                     d_model=D)

    y_pk = y_flat.reshape(B, L, 2 * D)
    yr = y_pk[:, :, :D].transpose(1, 0, 2)        # back to torch (L, B, D)
    yi = y_pk[:, :, D:].transpose(1, 0, 2)
    return yr, yi


# -----------------------------------------------------------------------------
# Pure-JAX reference (same math, HIGHEST precision f32) for verification.
# -----------------------------------------------------------------------------
def reference_encoder(src_real, src_imag, params, *, nhead):
    N, B, D, h, w = src_real.shape
    hw = h * w
    L = N * hw
    dh = D // nhead
    hp = jax.lax.Precision.HIGHEST

    def to_tokens(x):
        return (x.reshape(N, B, D, hw).transpose(0, 3, 1, 2)
                 .reshape(L, B, D).transpose(1, 0, 2))

    xr, xi = to_tokens(src_real), to_tokens(src_imag)

    def cmm(ar, ai, br, bi):
        return (jnp.matmul(ar, br, precision=hp) - jnp.matmul(ai, bi, precision=hp),
                jnp.matmul(ar, bi, precision=hp) + jnp.matmul(ai, br, precision=hp))

    p = params
    qr, qi = cmm(xr, xi, p["wq_r"], p["wq_i"])
    kr, ki = cmm(xr, xi, p["wk_r"], p["wk_i"])
    vr, vi = cmm(xr, xi, p["wv_r"], p["wv_i"])

    def heads(t):
        return t.reshape(B, L, nhead, dh).transpose(0, 2, 1, 3)

    qr, qi, kr, ki, vr, vi = map(heads, (qr, qi, kr, ki, vr, vi))
    scores = (jnp.einsum("bhld,bhmd->bhlm", qr, kr, precision=hp) +
              jnp.einsum("bhld,bhmd->bhlm", qi, ki, precision=hp)) / math.sqrt(dh)
    attn = jax.nn.softmax(scores, axis=-1)
    ar = jnp.einsum("bhlm,bhmd->bhld", attn, vr, precision=hp)
    ai = jnp.einsum("bhlm,bhmd->bhld", attn, vi, precision=hp)
    ar = ar.transpose(0, 2, 1, 3).reshape(B, L, D)
    ai = ai.transpose(0, 2, 1, 3).reshape(B, L, D)
    s2r, s2i = cmm(ar, ai, p["wo_r"], p["wo_i"])
    sr, si = xr + s2r, xi + s2i

    scale = math.sqrt(1.0 / (D * 4 * 4))
    eps = 1e-5

    def inorm(s):
        g = s.reshape(B, N, hw * D)
        f = scale * jnp.sqrt((hw * D) / (jnp.sum(g * g, axis=-1, keepdims=True) + eps))
        return (g * f).reshape(B, L, D)

    return inorm(sr).transpose(1, 0, 2), inorm(si).transpose(1, 0, 2)


if __name__ == "__main__":
    # Small shapes consistent with the module (h=w=4 matches norm_scale's 4*4).
    N, B, D, h, w = 2, 2, 32, 4, 4
    nhead = 4

    key = jax.random.PRNGKey(0)
    keys = jax.random.split(key, 10)
    src_real = jax.random.normal(keys[0], (N, B, D, h, w), jnp.float32)
    src_imag = jax.random.normal(keys[1], (N, B, D, h, w), jnp.float32)

    wscale = 1.0 / math.sqrt(D)
    names = ["wq_r", "wq_i", "wk_r", "wk_i", "wv_r", "wv_i", "wo_r", "wo_i"]
    params = {n: wscale * jax.random.normal(k, (D, D), jnp.float32)
              for n, k in zip(names, keys[2:10])}

    fwd = jax.jit(functools.partial(com_transformer_encoder, nhead=nhead))
    out_r, out_i = fwd(src_real, src_imag, params)
    jax.block_until_ready((out_r, out_i))

    ref_r, ref_i = reference_encoder(src_real, src_imag, params, nhead=nhead)
    assert out_r.shape == (N * h * w, B, D) and out_i.shape == (N * h * w, B, D)
    # bf16 MXU operands (f32 accumulation) + approx EUP reciprocal -> slightly
    # wider tolerance vs. the f32 HIGHEST-precision reference.
    assert jnp.allclose(out_r, ref_r, atol=2e-2, rtol=2e-2)
    assert jnp.allclose(out_i, ref_i, atol=2e-2, rtol=2e-2)

    print("KERNEL_OK")
</pallas_src>

<mosaic_0001>
module attributes {stable_mosaic.version = 11 : i64} {
  func.func @_fused_encoder_kernel(%arg0: i32, %arg1: memref<64x64xf32, #tpu.memory_space<vmem>>, %arg2: memref<64x192xbf16, #tpu.memory_space<vmem>>, %arg3: memref<64x64xbf16, #tpu.memory_space<vmem>>, %arg4: memref<32x128xf32, #tpu.memory_space<vmem>>) attributes {dimension_semantics = [#tpu.dimension_semantics<arbitrary>], iteration_bounds = array<i64: 1>, scalar_prefetch = 0 : i64, scratch_operands = 0 : i64, tpu.core_type = #tpu.core_type<tc>, window_params = [{pipeline_mode = #tpu.pipeline_mode<synchronous>, transform_indices = @transform_0, window_bounds = array<i64: 64, 64>}, {pipeline_mode = #tpu.pipeline_mode<synchronous>, transform_indices = @transform_1, window_bounds = array<i64: 64, 192>}, {pipeline_mode = #tpu.pipeline_mode<synchronous>, transform_indices = @transform_2, window_bounds = array<i64: 64, 64>}, {pipeline_mode = #tpu.pipeline_mode<synchronous>, transform_indices = @transform_3, window_bounds = array<i64: 32, 128>}]} {
    %c0 = arith.constant 0 : index
    %c0_0 = arith.constant 0 : index
    %0 = vector.load %arg1[%c0, %c0_0] : memref<64x64xf32, #tpu.memory_space<vmem>>, vector<64x64xf32>
    %c0_1 = arith.constant 0 : index
    %c0_2 = arith.constant 0 : index
    %1 = vector.load %arg2[%c0_1, %c0_2] : memref<64x192xbf16, #tpu.memory_space<vmem>>, vector<64x192xbf16>
    %c0_3 = arith.constant 0 : index
    %c0_4 = arith.constant 0 : index
    %2 = vector.load %arg3[%c0_3, %c0_4] : memref<64x64xbf16, #tpu.memory_space<vmem>>, vector<64x64xbf16>
    %3 = arith.truncf %0 : vector<64x64xf32> to vector<64x64xbf16>
    %cst = arith.constant dense<0.000000e+00> : vector<64x192xf32>
    %4 = tpu.matmul %3, %1, %cst {dimension_numbers = #tpu.dot_dimension_numbers<[1], [0], [0], [1], [0, 0, 1, 1], [], []>} : vector<64x64xbf16>, vector<64x192xbf16>, vector<64x192xf32> -> vector<64x192xf32>
    %5 = arith.truncf %4 : vector<64x192xf32> to vector<64x192xbf16>
    %6 = vector.extract_strided_slice %5 {offsets = [0, 0], sizes = [64, 16], strides = [1, 1]} : vector<64x192xbf16> to vector<64x16xbf16>
    %7 = vector.extract_strided_slice %5 {offsets = [0, 16], sizes = [64, 16], strides = [1, 1]} : vector<64x192xbf16> to vector<64x16xbf16>
    %8 = vector.extract_strided_slice %5 {offsets = [0, 32], sizes = [64, 16], strides = [1, 1]} : vector<64x192xbf16> to vector<64x16xbf16>
    %9 = vector.extract_strided_slice %5 {offsets = [0, 48], sizes = [64, 16], strides = [1, 1]} : vector<64x192xbf16> to vector<64x16xbf16>
    %10 = tpu.concatenate %6, %7, %8, %9 in 0 : vector<64x16xbf16>, vector<64x16xbf16>, vector<64x16xbf16>, vector<64x16xbf16> -> vector<256x16xbf16>
    %11 = vector.extract_strided_slice %5 {offsets = [0, 64], sizes = [64, 16], strides = [1, 1]} : vector<64x192xbf16> to vector<64x16xbf16>
    %12 = vector.extract_strided_slice %5 {offsets = [0, 80], sizes = [64, 16], strides = [1, 1]} : vector<64x192xbf16> to vector<64x16xbf16>
    %13 = vector.extract_strided_slice %5 {offsets = [0, 96], sizes = [64, 16], strides = [1, 1]} : vector<64x192xbf16> to vector<64x16xbf16>
    %14 = vector.extract_strided_slice %5 {offsets = [0, 112], sizes = [64, 16], strides = [1, 1]} : vector<64x192xbf16> to vector<64x16xbf16>
    %15 = tpu.concatenate %11, %12, %13, %14 in 0 : vector<64x16xbf16>, vector<64x16xbf16>, vector<64x16xbf16>, vector<64x16xbf16> -> vector<256x16xbf16>
    %16 = vector.extract_strided_slice %5 {offsets = [0, 128], sizes = [64, 16], strides = [1, 1]} : vector<64x192xbf16> to vector<64x16xbf16>
    %17 = vector.extract_strided_slice %5 {offsets = [0, 144], sizes = [64, 16], strides = [1, 1]} : vector<64x192xbf16> to vector<64x16xbf16>
    %18 = vector.extract_strided_slice %5 {offsets = [0, 160], sizes = [64, 16], strides = [1, 1]} : vector<64x192xbf16> to vector<64x16xbf16>
    %19 = vector.extract_strided_slice %5 {offsets = [0, 176], sizes = [64, 16], strides = [1, 1]} : vector<64x192xbf16> to vector<64x16xbf16>
    %20 = tpu.concatenate %16, %17, %18, %19 in 0 : vector<64x16xbf16>, vector<64x16xbf16>, vector<64x16xbf16>, vector<64x16xbf16> -> vector<256x16xbf16>
    %cst_5 = arith.constant dense<0.000000e+00> : vector<256x256xf32>
    %21 = tpu.matmul %10, %15, %cst_5 {dimension_numbers = #tpu.dot_dimension_numbers<[1], [1], [0], [0], [0, 0, 1, 0], [], []>} : vector<256x16xbf16>, vector<256x16xbf16>, vector<256x256xf32> -> vector<256x256xf32>
    %22 = tpu.iota {dimensions = array<i32: 0>} : vector<256x1xi32>
    %23 = arith.sitofp %22 : vector<256x1xi32> to vector<256x1xf32>
    %cst_6 = arith.constant 5.000000e-01 : f32
    %24 = vector.broadcast %cst_6 : f32 to vector<256x1xf32>
    %25 = arith.addf %23, %24 : vector<256x1xf32>
    %cst_7 = arith.constant 3.125000e-02 : f32
    %26 = vector.broadcast %cst_7 : f32 to vector<256x1xf32>
    %27 = arith.mulf %25, %26 : vector<256x1xf32>
    %28 = math.floor %27 : vector<256x1xf32>
    %29 = tpu.iota {dimensions = array<i32: 1>} : vector<1x256xi32>
    %30 = arith.sitofp %29 : vector<1x256xi32> to vector<1x256xf32>
    %cst_8 = arith.constant 5.000000e-01 : f32
    %31 = vector.broadcast %cst_8 : f32 to vector<1x256xf32>
    %32 = arith.addf %30, %31 : vector<1x256xf32>
    %cst_9 = arith.constant 3.125000e-02 : f32
    %33 = vector.broadcast %cst_9 : f32 to vector<1x256xf32>
    %34 = arith.mulf %32, %33 : vector<1x256xf32>
    %35 = math.floor %34 : vector<1x256xf32>
    %36 = vector.broadcast %28 : vector<256x1xf32> to vector<256x256xf32>
    %37 = vector.broadcast %35 : vector<1x256xf32> to vector<256x256xf32>
    %38 = arith.cmpf oeq, %36, %37 : vector<256x256xf32>
    %cst_10 = arith.constant -1.000000e+30 : f32
    %39 = vector.broadcast %cst_10 : f32 to vector<256x256xf32>
    %40 = arith.select %38, %21, %39 : vector<256x256xi1>, vector<256x256xf32>
    %cst_11 = arith.constant dense<0xFF800000> : vector<256xf32>
    %41 = vector.multi_reduction <maximumf>, %40, %cst_11 [1] : vector<256x256xf32> to vector<256xf32>
    %42 = vector.shape_cast %41 : vector<256xf32> to vector<256x1xf32>
    %43 = vector.broadcast %42 : vector<256x1xf32> to vector<256x256xf32>
    %44 = arith.subf %40, %43 : vector<256x256xf32>
    %45 = math.exp %44 : vector<256x256xf32>
    %cst_12 = arith.constant dense<0.000000e+00> : vector<256xf32>
    %46 = vector.multi_reduction <add>, %45, %cst_12 [1] : vector<256x256xf32> to vector<256xf32>
    %47 = vector.shape_cast %46 : vector<256xf32> to vector<256x1xf32>
    %48 = tpu.reciprocal %47 {approx = true} : vector<256x1xf32> -> vector<256x1xf32>
    %49 = vector.broadcast %48 : vector<256x1xf32> to vector<256x256xf32>
    %50 = arith.mulf %45, %49 : vector<256x256xf32>
    %51 = arith.truncf %50 : vector<256x256xf32> to vector<256x256xbf16>
    %cst_13 = arith.constant dense<0.000000e+00> : vector<256x16xf32>
    %52 = tpu.matmul %51, %20, %cst_13 {dimension_numbers = #tpu.dot_dimension_numbers<[1], [0], [0], [1], [0, 0, 1, 1], [], []>} : vector<256x256xbf16>, vector<256x16xbf16>, vector<256x16xf32> -> vector<256x16xf32>
    %53 = vector.extract_strided_slice %52 {offsets = [0, 0], sizes = [64, 16], strides = [1, 1]} : vector<256x16xf32> to vector<64x16xf32>
    %54 = vector.extract_strided_slice %52 {offsets = [64, 0], sizes = [64, 16], strides = [1, 1]} : vector<256x16xf32> to vector<64x16xf32>
    %55 = vector.extract_strided_slice %52 {offsets = [128, 0], sizes = [64, 16], strides = [1, 1]} : vector<256x16xf32> to vector<64x16xf32>
    %56 = vector.extract_strided_slice %52 {offsets = [192, 0], sizes = [64, 16], strides = [1, 1]} : vector<256x16xf32> to vector<64x16xf32>
    %57 = tpu.concatenate %53, %54, %55, %56 in 1 : vector<64x16xf32>, vector<64x16xf32>, vector<64x16xf32>, vector<64x16xf32> -> vector<64x64xf32>
    %58 = arith.truncf %57 : vector<64x64xf32> to vector<64x64xbf16>
    %cst_14 = arith.constant dense<0.000000e+00> : vector<64x64xf32>
    %59 = tpu.matmul %58, %2, %cst_14 {dimension_numbers = #tpu.dot_dimension_numbers<[1], [0], [0], [1], [0, 0, 1, 1], [], []>} : vector<64x64xbf16>, vector<64x64xbf16>, vector<64x64xf32> -> vector<64x64xf32>
    %60 = arith.addf %0, %59 : vector<64x64xf32>
    %61 = vector.shape_cast %60 : vector<64x64xf32> to vector<4x16x64xf32>
    %62 = vector.extract_strided_slice %61 {offsets = [0, 0, 0], sizes = [4, 16, 32], strides = [1, 1, 1]} : vector<4x16x64xf32> to vector<4x16x32xf32>
    %63 = vector.extract_strided_slice %61 {offsets = [0, 0, 32], sizes = [4, 16, 32], strides = [1, 1, 1]} : vector<4x16x64xf32> to vector<4x16x32xf32>
    %64 = arith.mulf %62, %62 : vector<4x16x32xf32>
    %cst_15 = arith.constant dense<0.000000e+00> : vector<4x16xf32>
    %65 = vector.multi_reduction <add>, %64, %cst_15 [2] : vector<4x16x32xf32> to vector<4x16xf32>
    %66 = vector.shape_cast %65 : vector<4x16xf32> to vector<4x16x1xf32>
    %cst_16 = arith.constant dense<0.000000e+00> : vector<4x1xf32>
    %67 = vector.multi_reduction <add>, %66, %cst_16 [1] : vector<4x16x1xf32> to vector<4x1xf32>
    %68 = vector.shape_cast %67 : vector<4x1xf32> to vector<4x1x1xf32>
    %69 = arith.mulf %63, %63 : vector<4x16x32xf32>
    %cst_17 = arith.constant dense<0.000000e+00> : vector<4x16xf32>
    %70 = vector.multi_reduction <add>, %69, %cst_17 [2] : vector<4x16x32xf32> to vector<4x16xf32>
    %71 = vector.shape_cast %70 : vector<4x16xf32> to vector<4x16x1xf32>
    %cst_18 = arith.constant dense<0.000000e+00> : vector<4x1xf32>
    %72 = vector.multi_reduction <add>, %71, %cst_18 [1] : vector<4x16x1xf32> to vector<4x1xf32>
    %73 = vector.shape_cast %72 : vector<4x1xf32> to vector<4x1x1xf32>
    %cst_19 = arith.constant 9.99999974E-6 : f32
    %74 = vector.broadcast %cst_19 : f32 to vector<4x1x1xf32>
    %75 = arith.addf %68, %74 : vector<4x1x1xf32>
    %cst_20 = arith.constant 0.001953125 : f32
    %76 = vector.broadcast %cst_20 : f32 to vector<4x1x1xf32>
    %77 = arith.mulf %75, %76 : vector<4x1x1xf32>
    %78 = math.rsqrt %77 : vector<4x1x1xf32>
    %cst_21 = arith.constant 0.0441941731 : f32
    %79 = vector.broadcast %cst_21 : f32 to vector<4x1x1xf32>
    %80 = arith.mulf %79, %78 : vector<4x1x1xf32>
    %cst_22 = arith.constant 9.99999974E-6 : f32
    %81 = vector.broadcast %cst_22 : f32 to vector<4x1x1xf32>
    %82 = arith.addf %73, %81 : vector<4x1x1xf32>
    %cst_23 = arith.constant 0.001953125 : f32
    %83 = vector.broadcast %cst_23 : f32 to vector<4x1x1xf32>
    %84 = arith.mulf %82, %83 : vector<4x1x1xf32>
    %85 = math.rsqrt %84 : vector<4x1x1xf32>
    %cst_24 = arith.constant 0.0441941731 : f32
    %86 = vector.broadcast %cst_24 : f32 to vector<4x1x1xf32>
    %87 = arith.mulf %86, %85 : vector<4x1x1xf32>
    %88 = vector.broadcast %80 : vector<4x1x1xf32> to vector<4x16x32xf32>
    %89 = arith.mulf %62, %88 : vector<4x16x32xf32>
    %90 = vector.broadcast %87 : vector<4x1x1xf32> to vector<4x16x32xf32>
    %91 = arith.mulf %63, %90 : vector<4x16x32xf32>
    %92 = tpu.concatenate %89, %91 in 2 : vector<4x16x32xf32>, vector<4x16x32xf32> -> vector<4x16x64xf32>
    %93 = vector.shape_cast %92 : vector<4x16x64xf32> to vector<64x64xf32>
    %94 = vector.extract_strided_slice %93 {offsets = [0, 0], sizes = [32, 64], strides = [1, 1]} : vector<64x64xf32> to vector<32x64xf32>
    %95 = vector.extract_strided_slice %93 {offsets = [32, 0], sizes = [32, 64], strides = [1, 1]} : vector<64x64xf32> to vector<32x64xf32>
    %96 = tpu.concatenate %94, %95 in 1 : vector<32x64xf32>, vector<32x64xf32> -> vector<32x128xf32>
    %c0_25 = arith.constant 0 : index
    %c0_26 = arith.constant 0 : index
    %97 = vector.load %arg4[%c0_25, %c0_26] : memref<32x128xf32, #tpu.memory_space<vmem>>, vector<32x128xf32>
    tpu.vector_store %arg4[%c0_25, %c0_26], %96 {strides = array<i32>} : memref<32x128xf32, #tpu.memory_space<vmem>>, vector<32x128xf32>,
    return
  }
  func.func @transform_0(%arg0: i32) -> (i32, i32) {
    %c0_i32 = arith.constant 0 : i32
    %c0_i32_0 = arith.constant 0 : i32
    %c0_i32_1 = arith.constant 0 : i32
    return %c0_i32, %c0_i32_0 : i32, i32
  }
  func.func @transform_1(%arg0: i32) -> (i32, i32) {
    %c0_i32 = arith.constant 0 : i32
    %c0_i32_0 = arith.constant 0 : i32
    %c0_i32_1 = arith.constant 0 : i32
    return %c0_i32, %c0_i32_0 : i32, i32
  }
  func.func @transform_2(%arg0: i32) -> (i32, i32) {
    %c0_i32 = arith.constant 0 : i32
    %c0_i32_0 = arith.constant 0 : i32
    %c0_i32_1 = arith.constant 0 : i32
    return %c0_i32, %c0_i32_0 : i32, i32
  }
  func.func @transform_3(%arg0: i32) -> (i32, i32) {
    %c0_i32 = arith.constant 0 : i32
    %c0_i32_0 = arith.constant 0 : i32
    %c0_i32_1 = arith.constant 0 : i32
    return %c0_i32, %c0_i32_0 : i32, i32
  }
}

</mosaic_0001>

<bundles_post_ra>
// kernel: neg.6
= control target key start
LH: loop header
LB: loop body
LE: loop exit
PB: predicated region body
PF: predicated region fallthrough
CT: control target
= control target key end

     0   :  { %s81_s0 = inlined_call_operand.vmem [shape: f32[32,32], index: 0, kind: input, shape index: {}]   ;;  %s82_s1 = inlined_call_operand.vmem [shape: bf16[32,32], index: 1, kind: output, shape index: {}]  }
   0x1   :  { %v2_v0 = vld [vmem:[%s81_s0] sm:$0xff]  ;;  %v36_v1 = vld [vmem:[%s81_s0 + $0x8] sm:$0xff]  ;;  %v38_v2 = vld [vmem:[%s81_s0 + $0x10] sm:$0xff] }
   0x2   :  { %v5_v3 = vxor.u32 2147483648, %v2_v0  ;;  %v13_v4 = vxor.u32 2147483648, %v36_v1  ;;  %v22_v5 = vxor.u32 2147483648, %v38_v2  ;;  %v40_v6 = vld [vmem:[%s81_s0 + $0x18] sm:$0xff] }
   0x3   :  { %v31_v7 = vxor.u32 2147483648, %v40_v6 }
   0x4   :  { %v45_v8 = vpack.c.bf16 %v13_v4, %v5_v3 }
   0x5   :  { %v50_v9 = vpack.c.bf16 %v31_v7, %v22_v5 }
   0x6   :  { %46 = vst [vmem:[%s82_s1] sm:$0xff] %v45_v8  }
   0x7   :  { %52 = vst [vmem:[%s82_s1 + $0x8] sm:$0xff] %v50_v9  }

// kernel: com_transformer_encoder.1
= control target key start
LH: loop header
LB: loop body
LE: loop exit
PB: predicated region body
PF: predicated region fallthrough
CT: control target
= control target key end

     0   :  { %v2531_v1 = vmov 0   ;;  %vm83_vm0 = vcmask 523264   ;;  %vm277_vm1 = vcmask 130048   ;;  %s2532_s16 = smov 96   ;;  %s2533_s17 = smov 112   ;;  %s3764_s1 = inlined_call_operand.vmem [shape: bf16[64,192], index: 1, kind: input, shape index: {}]   ;;  %s3765_s0 = inlined_call_operand.vmem [shape: f32[64,64], index: 0, kind: input, shape index: {}]   ;;  %s3766_s2 = inlined_call_operand.vmem [shape: bf16[64,64], index: 2, kind: input, shape index: {}]   ;;  %s3767_s3 = inlined_call_operand.vmem [shape: f32[32,128], index: 3, kind: output, shape index: {}]  }
   0x1   :  { %v2299_v0 = vld [vmem:[%s3764_s1 + $0x4] ss:$8 sps:$4 sm:$0xff]   ;;  %128 = vmatprep.mubr.bf16.mxu0 %v2531_v1  ;;  %v2301_v2 = vld [vmem:[%s3764_s1] ss:$8 sps:$4 sm:$0xff]   ;;  %v2302_v3 = vld [vmem:[%s3764_s1 + $0x14] ss:$8 sps:$4 sm:$0xff]  }
   0x2   :  { %96 = vmatprep.subr.bf16.mxu0 %v2299_v0  ;;  %v2304_v4 = vld [vmem:[%s3764_s1 + $0x10] ss:$8 sps:$4 sm:$0xff]   ;;  %v2305_v5 = vld [vmem:[%s3764_s1 + $0x24] ss:$8 sps:$4 sm:$0xff]   ;;  %v2307_v6 = vld [vmem:[%s3764_s1 + $0x20] ss:$8 sps:$4 sm:$0xff]  }
   0x3   :  { %97 = vmatpush1.bf16.msra.mxu0 %v2301_v2  ;;  %v2308_v7 = vld [vmem:[%s3764_s1 + $0x34] ss:$8 sps:$4 sm:$0xff]   ;;  %v2310_v8 = vld [vmem:[%s3764_s1 + $0x30] ss:$8 sps:$4 sm:$0xff]   ;;  %v15_v9 = vld [vmem:[%s3765_s0] sm:$0xff]  ;;  %s2534_s18 = smov 64  }
   0x4   :  { %98 = vmatprep.subr.bf16.mxu0 %v2302_v3  ;;  %v16_v10 = vld [vmem:[%s3765_s0 + $0x8] sm:$0xff]  ;;  %v17_v12 = vld [vmem:[%s3765_s0 + $0x10] sm:$0xff]  ;;  %v18_v13 = vld [vmem:[%s3765_s0 + $0x18] sm:$0xff]  ;;  %s2535_s19 = smov 80   ;;  %s2536_s20 = smov 16  }
   0x5   :  { %v39_v11 = vpack.c.bf16 %v16_v10, %v15_v9  ;;  %v40_v14 = vpack.c.bf16 %v18_v13, %v17_v12  ;;  %v19_v15 = vld [vmem:[%s3765_s0 + $0x20] sm:$0xff]  ;;  %v20_v16 = vld [vmem:[%s3765_s0 + $0x28] sm:$0xff]  ;;  %v21_v18 = vld [vmem:[%s3765_s0 + $0x30] sm:$0xff]  ;;  %s2537_s25 = smov 32   ;;  %s2538_s30 = smov 48  }
   0x6   :  { %v41_v17 = vpack.c.bf16 %v20_v16, %v19_v15  ;;  %v22_v19 = vld [vmem:[%s3765_s0 + $0x38] sm:$0xff] }
   0x7   :  { %99 = vmatpush1.bf16.msra.mxu0 %v2304_v4  ;;  %v42_v20 = vpack.c.bf16 %v22_v19, %v21_v18 }
   0x8   :  { %100 = vmatprep.subr.bf16.mxu0 %v2305_v5 }
   0xb   :  { %101 = vmatpush1.bf16.msra.mxu0 %v2307_v6 }
   0xc   :  { %102 = vmatprep.subr.bf16.mxu0 %v2308_v7 }
   0xf   :  { %103 = vmatpush1.bf16.msra.mxu0 %v2310_v8 }
  0x12   :  { %2011 = vmatmul.mubr.msk.bf16.vlgmr.msra.gmra.mrb[0].mxu0 %vm83_vm0, %v39_v11 }
  0x13   :  { %138 = vmatprep.mubr.bf16.mxu0 %v2531_v1 }
  0x1a   :  { %2012 = vmatmul.mubr.msk.bf16.gmra.mrb[4].mxu0 %vm83_vm0, %v40_v14 }
  0x1b   :  { %148 = vmatprep.mubr.bf16.mxu0 %v2531_v1 }
  0x22   :  { %2013 = vmatmul.mubr.msk.bf16.gmra.mrb[8].mxu0 %vm83_vm0, %v41_v17 }
  0x23   :  { %158 = vmatprep.mubr.bf16.mxu0 %v2531_v1 }
  0x2a   :  { %2014 = vmatmul.mubr.msk.bf16.gmra.mrb[12].mxu0 %vm83_vm0, %v42_v20 }
  0xe5   :  { %v130_v21 = vpop.f32.mrb[0].mxu0 }
  0xe6   :  { %v132_v22 = vpop.f32.mrb[1].mxu0 }
  0xe7   :  { %v134_v23 = vpop.f32.mrb[2].mxu0 }
  0xe8   :  { %v2611_v24 = vpack.c.bf16 %v134_v23, %v130_v21  ;;  %v136_v25 = vpop.f32.mrb[3].mxu0 }
  0xe9   :  { %v2613_v26 = vpack.c.bf16 %v136_v25, %v132_v22 }
  0xea   :  { %189 = vrot.lane.b32.xlu0 %v2611_v24, %s2532_s16  ;;  %2055 = vmatprep.mubr.msk.bf16.mxu1 %vm277_vm1, %v2611_v24 }
  0xed   :  { %v140_v27 = vpop.f32.mrb[4].mxu0 }
  0xee   :  { %v142_v28 = vpop.f32.mrb[5].mxu0 }
  0xef   :  { %v144_v29 = vpop.f32.mrb[6].mxu0 }
  0xf0   :  { %v2619_v30 = vpack.c.bf16 %v144_v29, %v140_v27  ;;  %v146_v31 = vpop.f32.mrb[7].mxu0 }
  0xf1   :  { %v2621_v32 = vpack.c.bf16 %v146_v31, %v142_v28 }
  0xf2   :  { %191 = vrot.lane.b32.xlu0 %v2619_v30, %s2532_s16 }
  0xf5   :  { %v150_v33 = vpop.f32.mrb[8].mxu0 }
  0xf6   :  { %181 = vrot.lane.b32.xlu0 %v2611_v24, %s2533_s17  ;;  %v152_v34 = vpop.f32.mrb[9].mxu0 }
  0xf7   :  { %v154_v35 = vpop.f32.mrb[10].mxu0 }
  0xf8   :  { %v2627_v36 = vpack.c.bf16 %v154_v35, %v150_v33  ;;  %v156_v37 = vpop.f32.mrb[11].mxu0 }
  0xf9   :  { %v2629_v38 = vpack.c.bf16 %v156_v37, %v152_v34 }
  0xfa   :  { %183 = vrot.lane.b32.xlu0 %v2619_v30, %s2533_s17  ;;  %193 = vrot.lane.b32.xlu1 %v2627_v36, %s2532_s16 }
  0xfd   :  { %v160_v39 = vpop.f32.mrb[12].mxu0 }
  0xfe   :  { %185 = vrot.lane.b32.xlu0 %v2627_v36, %s2533_s17  ;;  %v162_v40 = vpop.f32.mrb[13].mxu0 }
  0xff   :  { %v164_v41 = vpop.f32.mrb[14].mxu0 }
 0x100   :  { %v2637_v42 = vpack.c.bf16 %v164_v41, %v160_v39  ;;  %v166_v43 = vpop.f32.mrb[15].mxu0 }
 0x101   :  { %v2639_v44 = vpack.c.bf16 %v166_v43, %v162_v40 }
 0x102   :  { %187 = vrot.lane.b32.xlu0 %v2637_v42, %s2533_s17  ;;  %195 = vrot.lane.b32.xlu1 %v2637_v42, %s2532_s16 }
 0x106   :  { %245 = vrot.lane.b32.xlu0 %v2611_v24, %s2534_s18  ;;  %197 = vrot.lane.b32.xlu1 %v2611_v24, %s2535_s19 }
 0x10a   :  { %247 = vrot.lane.b32.xlu0 %v2619_v30, %s2534_s18  ;;  %199 = vrot.lane.b32.xlu1 %v2619_v30, %s2535_s19 }
 0x10e   :  { %249 = vrot.lane.b32.xlu0 %v2627_v36, %s2534_s18  ;;  %201 = vrot.lane.b32.xlu1 %v2627_v36, %s2535_s19 }
 0x112   :  { %251 = vrot.lane.b32.xlu0 %v2637_v42, %s2534_s18  ;;  %203 = vrot.lane.b32.xlu1 %v2637_v42, %s2535_s19 }
 0x15c   :  { %v2661_v45 = vpop.permute.xlu0 %189 }
 0x15d   :  { %261 = vrot.lane.b32.xlu1 %v2661_v45, %s2534_s18 }
 0x164   :  { %v2665_v46 = vpop.permute.xlu0 %191 }
 0x165   :  { %263 = vrot.lane.b32.xlu1 %v2665_v46, %s2534_s18 }
 0x168   :  { %v2669_v47 = vpop.permute.xlu0 %181 }
 0x169   :  { %253 = vrot.lane.b32.xlu0 %v2669_v47, %s2534_s18 }
 0x16c   :  { %v2673_v48 = vpop.permute.xlu0 %183  ;;  %v2675_v49 = vpop.permute.xlu1 %193 }
 0x16d   :  { %255 = vrot.lane.b32.xlu0 %v2673_v48, %s2534_s18  ;;  %265 = vrot.lane.b32.xlu1 %v2675_v49, %s2534_s18 }
 0x170   :  { %v2681_v50 = vpop.permute.xlu0 %185 }
 0x171   :  { %257 = vrot.lane.b32.xlu0 %v2681_v50, %s2534_s18 }
 0x174   :  { %v2685_v51 = vpop.permute.xlu0 %187  ;;  %v2687_v52 = vpop.permute.xlu1 %195 }
 0x175   :  { %259 = vrot.lane.b32.xlu0 %v2685_v51, %s2534_s18  ;;  %267 = vrot.lane.b32.xlu1 %v2687_v52, %s2534_s18 }
 0x178   :  { %v2693_v53 = vpop.permute.xlu1 %197  ;;  %v246_v57 = vpop.permute.xlu0 %245 }
 0x179   :  { %225 = vrot.lane.b32.xlu0 %v2629_v38, %s2532_s16  ;;  %269 = vrot.lane.b32.xlu1 %v2693_v53, %s2534_s18  ;;  %v327_v59 = vsel %vm277_vm1, %v246_v57, 0 }
 0x17c   :  { %v2699_v54 = vpop.permute.xlu1 %199  ;;  %v248_v60 = vpop.permute.xlu0 %247 }
 0x17d   :  { %233 = vrot.lane.b32.xlu0 %v2613_v26, %s2535_s19  ;;  %271 = vrot.lane.b32.xlu1 %v2699_v54, %s2534_s18  ;;  %v330_v62 = vsel %vm277_vm1, %v248_v60, 0 }
 0x180   :  { %v2705_v55 = vpop.permute.xlu1 %201  ;;  %v250_v63 = vpop.permute.xlu0 %249 }
 0x181   :  { %211 = vrot.lane.b32.xlu0 %v2621_v32, %s2533_s17  ;;  %273 = vrot.lane.b32.xlu1 %v2705_v55, %s2534_s18  ;;  %v333_v1 = vsel %vm277_vm1, %v250_v63, 0 }
 0x184   :  { %v2711_v56 = vpop.permute.xlu1 %203  ;;  %v252_v2 = vpop.permute.xlu0 %251 }
 0x185   :  { %275 = vrot.lane.b32.xlu1 %v2711_v56, %s2534_s18  ;;  %v336_v4 = vsel %vm277_vm1, %v252_v2, 0 }
 0x189   :  { %221 = vrot.lane.b32.xlu1 %v2613_v26, %s2532_s16 }
 0x18d   :  { %223 = vrot.lane.b32.xlu1 %v2621_v32, %s2532_s16 }
 0x191   :  { %227 = vrot.lane.b32.xlu1 %v2639_v44, %s2532_s16 }
 0x195   :  { %209 = vrot.lane.b32.xlu1 %v2613_v26, %s2533_s17 }
 0x199   :  { %235 = vrot.lane.b32.xlu1 %v2621_v32, %s2535_s19 }
 0x19d   :  { %237 = vrot.lane.b32.xlu1 %v2629_v38, %s2535_s19 }
 0x1cf   :  { %v262_v58 = vpop.permute.xlu1 %261 }
 0x1d0   :  { %2223 = vmatprep.subr.msk.bf16.mxu1 %vm277_vm1, %v262_v58 }
 0x1d1   :  { %2040 = vmatpush3.bf16.xpose.msra.mxu1 %v327_v59 }
 0x1d7   :  { %v264_v61 = vpop.permute.xlu1 %263 }
 0x1d8   :  { %2224 = vmatprep.subr.msk.bf16.mxu1 %vm277_vm1, %v264_v61 }
 0x1d9   :  { %2042 = vmatpush3.bf16.xpose.msra.mxu1 %v330_v62 }
 0x1db   :  { %v254_v5 = vpop.permute.xlu0 %253 }
 0x1dc   :  { %v339_v9 = vsel %vm277_vm1, %v254_v5, 0 }
 0x1df   :  { %v266_v0 = vpop.permute.xlu1 %265  ;;  %v256_v7 = vpop.permute.xlu0 %255 }
 0x1e0   :  { %2225 = vmatprep.subr.msk.bf16.mxu1 %vm277_vm1, %v266_v0  ;;  %v342_v13 = vsel %vm277_vm1, %v256_v7, 0 }
 0x1e1   :  { %2044 = vmatpush3.bf16.xpose.msra.mxu1 %v333_v1 }
 0x1e3   :  { %v258_v11 = vpop.permute.xlu0 %257 }
 0x1e4   :  { %v345_v17 = vsel %vm277_vm1, %v258_v11, 0 }
 0x1e7   :  { %v268_v3 = vpop.permute.xlu1 %267  ;;  %v260_v14 = vpop.permute.xlu0 %259 }
 0x1e8   :  { %2226 = vmatprep.subr.msk.bf16.mxu1 %vm277_vm1, %v268_v3  ;;  %v348_v21 = vsel %vm277_vm1, %v260_v14, 0 }
 0x1e9   :  { %2046 = vmatpush3.bf16.xpose.msra.mxu1 %v336_v4 }
 0x1eb   :  { %v270_v6 = vpop.permute.xlu1 %269  ;;  %v226_v18 = vpop.permute.xlu0 %225 }
 0x1ec   :  { %2227 = vmatprep.subr.msk.bf16.mxu1 %vm277_vm1, %v270_v6 }
 0x1ef   :  { %v272_v8 = vpop.permute.xlu1 %271  ;;  %v234_v22 = vpop.permute.xlu0 %233 }
 0x1f1   :  { %2048 = vmatpush3.bf16.xpose.msra.mxu1 %v339_v9 }
 0x1f2   :  { %2228 = vmatprep.subr.msk.bf16.mxu1 %vm277_vm1, %v272_v8 }
 0x1f3   :  { %v274_v10 = vpop.permute.xlu1 %273  ;;  %v212_v25 = vpop.permute.xlu0 %211 }
 0x1f7   :  { %v276_v12 = vpop.permute.xlu1 %275 }
 0x1f9   :  { %2050 = vmatpush3.bf16.xpose.msra.mxu1 %v342_v13 }
 0x1fa   :  { %2229 = vmatprep.subr.msk.bf16.mxu1 %vm277_vm1, %v274_v10 }
 0x1fb   :  { %v222_v15 = vpop.permute.xlu1 %221 }
 0x1fc   :  { %2087 = vmatprep.subr.bf16.mxu0 %v222_v15 }
 0x1fd   :  { %2088 = vmatpush3.bf16.msra.mxu0 %v2613_v26 }
 0x1ff   :  { %v224_v16 = vpop.permute.xlu1 %223 }
 0x200   :  { %2089 = vmatprep.subr.bf16.mxu0 %v224_v16 }
 0x201   :  { %2052 = vmatpush3.bf16.xpose.msra.mxu1 %v345_v17  ;;  %2090 = vmatpush3.bf16.msra.mxu0 %v2621_v32 }
 0x202   :  { %2230 = vmatprep.subr.msk.bf16.mxu1 %vm277_vm1, %v276_v12  ;;  %2091 = vmatprep.subr.bf16.mxu0 %v226_v18 }
 0x203   :  { %v228_v19 = vpop.permute.xlu1 %227 }
 0x205   :  { %2092 = vmatpush3.bf16.msra.mxu0 %v2629_v38 }
 0x206   :  { %2093 = vmatprep.subr.bf16.mxu0 %v228_v19 }
 0x207   :  { %v210_v20 = vpop.permute.xlu1 %209 }
 0x209   :  { %2054 = vmatpush3.bf16.xpose.msra.mxu1 %v348_v21  ;;  %2094 = vmatpush3.bf16.msra.mxu0 %v2639_v44 }
 0x20a   :  { %2095 = vmatprep.subr.bf16.mxu0 %v234_v22 }
 0x20b   :  { %v236_v23 = vpop.permute.xlu1 %235 }
 0x20d   :  { %2096 = vmatpush3.bf16.msra.mxu0 %v210_v20 }
 0x20e   :  { %2097 = vmatprep.subr.bf16.mxu0 %v236_v23 }
 0x20f   :  { %v238_v26 = vpop.permute.xlu1 %237 }
 0x210   :  { %2056 = vmatmul.mubr.msk.bf16.vlgmr.msra.gmra.mrb[0].mxu1 %vm277_vm1, %v2611_v24  ;;  %v567_v24 = vlaneseq }
 0x211   :  { %2057 = vmatprep.mubr.msk.bf16.mxu1 %vm277_vm1, %v2619_v30  ;;  %2098 = vmatpush3.bf16.msra.mxu0 %v212_v25 }
 0x212   :  { %2099 = vmatprep.subr.bf16.mxu0 %v238_v26  ;;  %v729_v27 = vand.u32 127, %v567_v24  ;;  %v2809_v28 = vshrl.u32 %v567_v24, 7 }
 0x214   :  { %v730_v29 = vadd.s32 128, %v729_v27  ;;  %v600_v31 = vcvt.s32.f32 %v2809_v28  ;;  %v731_v32 = vcvt.s32.f32 %v729_v27  ;;  %v570_v37 = vadd.s32 16, %v2809_v28 }
 0x215   :  { %v571_v41 = vadd.s32 24, %v2809_v28  ;;  %v575_v6 = vadd.s32 56, %v2809_v28  ;;  %v577_v22 = vadd.s32 72, %v2809_v28 }
 0x216   :  { %v732_v33 = vcvt.s32.f32 %v730_v29  ;;  %v632_v35 = vadd.f32 0.5, %v600_v31 }
 0x217   :  { %v607_v11 = vcvt.s32.f32 %v575_v6  ;;  %v609_v24 = vcvt.s32.f32 %v577_v22  ;;  %v576_v6 = vadd.s32 64, %v2809_v28 }
 0x218   :  { %2058 = vmatmul.mubr.msk.bf16.gmra.mrb[4].mxu1 %vm277_vm1, %v2619_v30  ;;  %v569_v30 = vadd.s32 8, %v2809_v28  ;;  %v734_v39 = vadd.f32 0.5, %v732_v33 }
 0x219   :  { %2059 = vmatprep.mubr.msk.bf16.mxu1 %vm277_vm1, %v2627_v36  ;;  %v639_v21 = vadd.f32 0.5, %v607_v11 }
 0x21a   :  { %v601_v34 = vcvt.s32.f32 %v569_v30 }
 0x21b   :  { %v671_v26 = vmul.f32 0.03125, %v639_v21 }
 0x21c   :  { %v633_v40 = vadd.f32 0.5, %v601_v34  ;;  %v641_v34 = vadd.f32 0.5, %v609_v24 }
 0x21d   :  { %v703_v33 = vfloor.f32 %v671_v26 }
 0x220   :  { %2060 = vmatmul.mubr.msk.bf16.gmra.mrb[8].mxu1 %vm277_vm1, %v2627_v36  ;;  %v733_v36 = vadd.f32 0.5, %v731_v32 }
 0x221   :  { %2061 = vmatprep.mubr.msk.bf16.mxu1 %vm277_vm1, %v2637_v42 }
 0x222   :  { %v735_v43 = vmul.f32 0.03125, %v733_v36 }
 0x228   :  { %2062 = vmatmul.mubr.msk.bf16.gmra.mrb[12].mxu1 %vm277_vm1, %v2637_v42  ;;  %v664_v42 = vmul.f32 0.03125, %v632_v35  ;;  %v579_v35 = vadd.s32 88, %v2809_v28 }
 0x229   :  { %2063 = vmatprep.mubr.msk.bf16.mxu1 %vm277_vm1, %v2669_v47 }
 0x230   :  { %2064 = vmatmul.mubr.msk.bf16.gmra.mrb[16].mxu1 %vm277_vm1, %v2669_v47  ;;  %v665_v47 = vmul.f32 0.03125, %v633_v40  ;;  %v611_v40 = vcvt.s32.f32 %v579_v35 }
 0x231   :  { %2065 = vmatprep.mubr.msk.bf16.mxu1 %vm277_vm1, %v2673_v48 }
 0x238   :  { %2066 = vmatmul.mubr.msk.bf16.gmra.mrb[20].mxu1 %vm277_vm1, %v2673_v48  ;;  %v603_v48 = vcvt.s32.f32 %v571_v41 }
 0x239   :  { %2067 = vmatprep.mubr.msk.bf16.mxu1 %vm277_vm1, %v2681_v50 }
 0x240   :  { %2068 = vmatmul.mubr.msk.bf16.gmra.mrb[24].mxu1 %vm277_vm1, %v2681_v50  ;;  %v2815_v50 = vfloor.f32 %v735_v43 }
 0x241   :  { %2069 = vmatprep.mubr.msk.bf16.mxu1 %vm277_vm1, %v2685_v51 }
 0x242   :  { %vm753_vm12 = vcmp.eq.f32.partialorder %v703_v33, %v2815_v50 }
 0x248   :  { %2070 = vmatmul.mubr.msk.bf16.gmra.mrb[28].mxu1 %vm277_vm1, %v2685_v51 }
 0x249   :  { %2071 = vmatprep.mubr.msk.bf16.mxu1 %vm277_vm1, %v2661_v45 }
 0x250   :  { %2072 = vmatmul.mubr.msk.bf16.gmra.mrb[32].mxu1 %vm277_vm1, %v2661_v45  ;;  %v602_v45 = vcvt.s32.f32 %v570_v37 }
 0x251   :  { %2073 = vmatprep.mubr.msk.bf16.mxu1 %vm277_vm1, %v2665_v46 }
 0x252   :  { %v634_v51 = vadd.f32 0.5, %v602_v45 }
 0x258   :  { %2074 = vmatmul.mubr.msk.bf16.gmra.mrb[36].mxu1 %vm277_vm1, %v2665_v46  ;;  %v736_v46 = vmul.f32 0.03125, %v734_v39  ;;  %v673_v39 = vmul.f32 0.03125, %v641_v34 }
 0x259   :  { %2075 = vmatprep.mubr.msk.bf16.mxu1 %vm277_vm1, %v2675_v49 }
 0x260   :  { %2076 = vmatmul.mubr.msk.bf16.gmra.mrb[40].mxu1 %vm277_vm1, %v2675_v49  ;;  %v696_v49 = vfloor.f32 %v664_v42 }
 0x261   :  { %2077 = vmatprep.mubr.msk.bf16.mxu1 %vm277_vm1, %v2687_v52 }
 0x262   :  { %vm739_vm2 = vcmp.eq.f32.partialorder %v696_v49, %v2815_v50 }
 0x268   :  { %2078 = vmatmul.mubr.msk.bf16.gmra.mrb[44].mxu1 %vm277_vm1, %v2687_v52  ;;  %v2817_v52 = vfloor.f32 %v736_v46 }
 0x269   :  { %2079 = vmatprep.mubr.msk.bf16.mxu1 %vm277_vm1, %v2693_v53 }
 0x26a   :  { %vm740_vm3 = vcmp.eq.f32.partialorder %v696_v49, %v2817_v52  ;;  %vm754_vm13 = vcmp.eq.f32.partialorder %v703_v33, %v2817_v52  ;;  %v581_v49 = vadd.s32 104, %v2809_v28  ;;  %v585_v33 = vadd.s32 136, %v2809_v28 }
 0x270   :  { %2080 = vmatmul.mubr.msk.bf16.gmra.mrb[48].mxu1 %vm277_vm1, %v2693_v53  ;;  %v573_v53 = vadd.s32 40, %v2809_v28 }
 0x271   :  { %2081 = vmatprep.mubr.msk.bf16.mxu1 %vm277_vm1, %v2699_v54 }
 0x272   :  { %v605_v57 = vcvt.s32.f32 %v573_v53 }
 0x274   :  { %v637_v4 = vadd.f32 0.5, %v605_v57 }
 0x276   :  { %v669_v9 = vmul.f32 0.03125, %v637_v4  ;;  %v583_v4 = vadd.s32 120, %v2809_v28 }
 0x278   :  { %2082 = vmatmul.mubr.msk.bf16.gmra.mrb[52].mxu1 %vm277_vm1, %v2699_v54  ;;  %v697_v54 = vfloor.f32 %v665_v47  ;;  %v701_v18 = vfloor.f32 %v669_v9  ;;  %v705_v47 = vfloor.f32 %v673_v39  ;;  %v580_v39 = vadd.s32 96, %v2809_v28 }
 0x279   :  { %2083 = vmatprep.mubr.msk.bf16.mxu1 %vm277_vm1, %v2705_v55 }
 0x27a   :  { %vm741_vm4 = vcmp.eq.f32.partialorder %v697_v54, %v2815_v50  ;;  %vm742_vm5 = vcmp.eq.f32.partialorder %v697_v54, %v2817_v52  ;;  %vm749_vm10 = vcmp.eq.f32.partialorder %v701_v18, %v2815_v50  ;;  %vm750_vm11 = vcmp.eq.f32.partialorder %v701_v18, %v2817_v52 }
 0x27b   :  { %vm757_vm14 = vcmp.eq.f32.partialorder %v705_v47, %v2815_v50  ;;  %vm758_vm15 = vcmp.eq.f32.partialorder %v705_v47, %v2817_v52 }
 0x280   :  { %2084 = vmatmul.mubr.msk.bf16.gmra.mrb[56].mxu1 %vm277_vm1, %v2705_v55  ;;  %v635_v55 = vadd.f32 0.5, %v603_v48  ;;  %v643_v48 = vadd.f32 0.5, %v611_v40 }
 0x281   :  { %2085 = vmatprep.mubr.msk.bf16.mxu1 %vm277_vm1, %v2711_v56 }
 0x282   :  { %v667_v61 = vmul.f32 0.03125, %v635_v55  ;;  %v675_v54 = vmul.f32 0.03125, %v643_v48  ;;  %v613_v55 = vcvt.s32.f32 %v581_v49  ;;  %v617_v48 = vcvt.s32.f32 %v585_v33 }
 0x284   :  { %v699_v8 = vfloor.f32 %v667_v61 }
 0x286   :  { %vm745_vm8 = vcmp.eq.f32.partialorder %v699_v8, %v2815_v50  ;;  %vm746_vm9 = vcmp.eq.f32.partialorder %v699_v8, %v2817_v52 }
 0x288   :  { %2086 = vmatmul.mubr.msk.bf16.gmra.mrb[60].mxu1 %vm277_vm1, %v2711_v56  ;;  %v666_v56 = vmul.f32 0.03125, %v634_v51  ;;  %v572_v51 = vadd.s32 32, %v2809_v28 }
 0x28a   :  { %v698_v0 = vfloor.f32 %v666_v56 }
 0x28c   :  { %vm743_vm6 = vcmp.eq.f32.partialorder %v698_v0, %v2815_v50  ;;  %vm744_vm7 = vcmp.eq.f32.partialorder %v698_v0, %v2817_v52 }
 0x2e3   :  { %v408_v58 = vpop.f32.mrb[0].mxu1 }
 0x2e4   :  { %v2823_v59 = vsel %vm739_vm2, %v408_v58, -1e+30  ;;  %v410_v60 = vpop.f32.mrb[1].mxu1  ;;  %v604_v58 = vcvt.s32.f32 %v572_v51  ;;  %v612_v51 = vcvt.s32.f32 %v580_v39 }
 0x2e5   :  { %v2826_v62 = vsel %vm740_vm3, %v410_v60, -1e+30  ;;  %v412_v63 = vpop.f32.mrb[2].mxu1  ;;  %v574_v60 = vadd.s32 48, %v2809_v28 }
 0x2e6   :  { %v2828_v1 = vsel %vm741_vm4, %v412_v63, -1e+30  ;;  %v414_v2 = vpop.f32.mrb[3].mxu1  ;;  %v867_v3 = vmax.f32 %v2823_v59, %v2826_v62  ;;  %v636_v8 = vadd.f32 0.5, %v604_v58 }
 0x2e7   :  { %v2832_v5 = vsel %vm742_vm5, %v414_v2, -1e+30  ;;  %v707_v2 = vfloor.f32 %v675_v54  ;;  %v606_v9 = vcvt.s32.f32 %v574_v60 }
 0x2e8   :  { %868 = vmax.xlane.f32.xlu0 %v867_v3  ;;  %v870_v7 = vmax.f32 %v2828_v1, %v2832_v5  ;;  %v645_v3 = vadd.f32 0.5, %v613_v55  ;;  %v668_v21 = vmul.f32 0.03125, %v636_v8 }
 0x2e9   :  { %vm761_vm2 = vcmp.eq.f32.partialorder %v707_v2, %v2815_v50  ;;  %vm762_vm3 = vcmp.eq.f32.partialorder %v707_v2, %v2817_v52  ;;  %v638_v22 = vadd.f32 0.5, %v606_v9  ;;  %v644_v9 = vadd.f32 0.5, %v612_v51 }
 0x2ea   :  { %871 = vmax.xlane.f32.xlu1 %v870_v7  ;;  %v677_v11 = vmul.f32 0.03125, %v645_v3  ;;  %v700_v40 = vfloor.f32 %v668_v21 }
 0x2eb   :  { %v418_v10 = vpop.f32.mrb[4].mxu1 }
 0x2ec   :  { %v2839_v12 = vsel %vm743_vm6, %v418_v10, -1e+30  ;;  %v420_v13 = vpop.f32.mrb[5].mxu1  ;;  %vm747_vm6 = vcmp.eq.f32.partialorder %v700_v40, %v2815_v50 }
 0x2ed   :  { %v2843_v14 = vsel %vm744_vm7, %v420_v13, -1e+30  ;;  %v422_v15 = vpop.f32.mrb[6].mxu1  ;;  %v615_v13 = vcvt.s32.f32 %v583_v4  ;;  %vm748_vm7 = vcmp.eq.f32.partialorder %v700_v40, %v2817_v52  ;;  %v649_v4 = vadd.f32 0.5, %v617_v48 }
 0x2ee   :  { %v424_v16 = vpop.f32.mrb[7].mxu1  ;;  %v873_v17 = vmax.f32 %v2839_v12, %v2843_v14  ;;  %v2847_v19 = vsel %vm745_vm8, %v422_v15, -1e+30  ;;  %v608_v15 = vcvt.s32.f32 %v576_v6  ;;  %v587_v6 = vadd.s32 152, %v2809_v28 }
 0x2ef   :  { %v2849_v20 = vsel %vm746_vm9, %v424_v16, -1e+30  ;;  %v578_v16 = vadd.s32 80, %v2809_v28 }
 0x2f0   :  { %874 = vmax.xlane.f32.xlu0 %v873_v17  ;;  %v876_v23 = vmax.f32 %v2847_v19, %v2849_v20  ;;  %v640_v34 = vadd.f32 0.5, %v608_v15  ;;  %v584_v15 = vadd.s32 128, %v2809_v28 }
 0x2f1   :  { %v610_v35 = vcvt.s32.f32 %v578_v16 }
 0x2f2   :  { %v672_v49 = vmul.f32 0.03125, %v640_v34  ;;  %v616_v39 = vcvt.s32.f32 %v584_v15  ;;  %v588_v15 = vadd.s32 160, %v2809_v28 }
 0x2f3   :  { %v2854_v25 = vpop.f32.mrb[8].mxu1 }
 0x2f4   :  { %877 = vmax.xlane.f32.xlu0 %v876_v23  ;;  %v2857_v27 = vpop.f32.mrb[9].mxu1  ;;  %v2931_v16 = vsel %vm747_vm6, %v2854_v25, -1e+30 }
 0x2f5   :  { %v432_v29 = vpop.f32.mrb[10].mxu1 }
 0x2f6   :  { %v2860_v30 = vsel %vm749_vm10, %v432_v29, -1e+30  ;;  %v434_v31 = vpop.f32.mrb[11].mxu1  ;;  %v709_v29 = vfloor.f32 %v677_v11 }
 0x2f7   :  { %v2862_v32 = vsel %vm750_vm11, %v434_v31, -1e+30  ;;  %v647_v31 = vadd.f32 0.5, %v615_v13 }
 0x2f8   :  { %v882_v36 = vmax.f32 %v2860_v30, %v2862_v32  ;;  %vm765_vm4 = vcmp.eq.f32.partialorder %v709_v29, %v2815_v50  ;;  %vm766_vm5 = vcmp.eq.f32.partialorder %v709_v29, %v2817_v52 }
 0x2f9   :  { %v679_v47 = vmul.f32 0.03125, %v647_v31  ;;  %v676_v31 = vmul.f32 0.03125, %v644_v9 }
 0x2fa   :  { %883 = vmax.xlane.f32.xlu0 %v882_v36 }
 0x2fb   :  { %v2867_v37 = vpop.f32.mrb[12].mxu1  ;;  %213 = vrot.lane.b32.xlu1 %v2629_v38, %s2533_s17  ;;  %v711_v3 = vfloor.f32 %v679_v47 }
 0x2fc   :  { %v2872_v41 = vpop.f32.mrb[13].mxu1 }
 0x2fd   :  { %v442_v42 = vpop.f32.mrb[14].mxu1  ;;  %vm769_vm10 = vcmp.eq.f32.partialorder %v711_v3, %v2815_v50 }
 0x2fe   :  { %v2875_v43 = vsel %vm753_vm12, %v442_v42, -1e+30  ;;  %v444_v45 = vpop.f32.mrb[15].mxu1  ;;  %v670_v42 = vmul.f32 0.03125, %v638_v22  ;;  %v681_v22 = vmul.f32 0.03125, %v649_v4  ;;  %vm770_vm12 = vcmp.eq.f32.partialorder %v711_v3, %v2817_v52 }
 0x2ff   :  { %v2877_v46 = vsel %vm754_vm13, %v444_v45, -1e+30  ;;  %v648_v3 = vadd.f32 0.5, %v616_v39 }
 0x300   :  { %v888_v38 = vmax.f32 %v2875_v43, %v2877_v46  ;;  %v702_v58 = vfloor.f32 %v670_v42 }
 0x302   :  { %889 = vmax.xlane.f32.xlu0 %v888_v38  ;;  %v642_v38 = vadd.f32 0.5, %v610_v35  ;;  %vm751_vm8 = vcmp.eq.f32.partialorder %v702_v58, %v2815_v50  ;;  %vm752_vm9 = vcmp.eq.f32.partialorder %v702_v58, %v2817_v52 }
 0x303   :  { %v2883_v53 = vpop.f32.mrb[16].mxu1  ;;  %v2950_v33 = vsel %vm751_vm8, %v2867_v37, -1e+30  ;;  %v2955_v40 = vsel %vm752_vm9, %v2872_v41, -1e+30  ;;  %v586_v37 = vadd.s32 144, %v2809_v28 }
 0x304   :  { %v2886_v56 = vpop.f32.mrb[17].mxu1  ;;  %v674_v8 = vmul.f32 0.03125, %v642_v38  ;;  %v713_v38 = vfloor.f32 %v681_v22  ;;  %v885_v4 = vmax.f32 %v2950_v33, %v2955_v40 }
 0x305   :  { %v452_v57 = vpop.f32.mrb[18].mxu1  ;;  %v618_v9 = vcvt.s32.f32 %v586_v37 }
 0x306   :  { %v2890_v61 = vsel %vm757_vm14, %v452_v57, -1e+30  ;;  %v454_v63 = vpop.f32.mrb[19].mxu1  ;;  %v582_v57 = vadd.s32 112, %v2809_v28  ;;  %v706_v25 = vfloor.f32 %v674_v8 }
 0x307   :  { %v2892_v0 = vsel %vm758_vm15, %v454_v63, -1e+30  ;;  %v650_v37 = vadd.f32 0.5, %v618_v9 }
 0x308   :  { %v894_v7 = vmax.f32 %v2890_v61, %v2892_v0  ;;  %v614_v13 = vcvt.s32.f32 %v582_v57  ;;  %v708_v57 = vfloor.f32 %v676_v31  ;;  %vm2971_vm14 = vcmp.eq.f32.partialorder %v706_v25, %v2815_v50 }
 0x309   :  { %vm2976_vm15 = vcmp.eq.f32.partialorder %v706_v25, %v2817_v52  ;;  %v680_v25 = vmul.f32 0.03125, %v648_v3 }
 0x30a   :  { %895 = vmax.xlane.f32.xlu0 %v894_v7  ;;  %v704_v7 = vfloor.f32 %v672_v49  ;;  %v646_v34 = vadd.f32 0.5, %v614_v13 }
 0x30b   :  { %v2898_v10 = vpop.f32.mrb[20].mxu1  ;;  %v712_v58 = vfloor.f32 %v680_v25 }
 0x30c   :  { %v2902_v17 = vpop.f32.mrb[21].mxu1  ;;  %vm2942_vm11 = vcmp.eq.f32.partialorder %v704_v7, %v2815_v50  ;;  %vm2958_vm13 = vcmp.eq.f32.partialorder %v704_v7, %v2817_v52  ;;  %v678_v8 = vmul.f32 0.03125, %v646_v34  ;;  %v3010_v29 = vsel %vm2971_vm14, %v2898_v10, -1e+30 }
 0x30d   :  { %v462_v18 = vpop.f32.mrb[22].mxu1  ;;  %v2990_v7 = vsel %vm2958_vm13, %v2886_v56, -1e+30 }
 0x30e   :  { %v2905_v23 = vsel %vm761_vm2, %v462_v18, -1e+30  ;;  %v464_v26 = vpop.f32.mrb[23].mxu1  ;;  %v2934_v18 = vsel %vm748_vm7, %v2857_v27, -1e+30  ;;  %vm773_vm2 = vcmp.eq.f32.partialorder %v713_v38, %v2815_v50  ;;  %v710_v39 = vfloor.f32 %v678_v8 }
 0x30f   :  { %v2907_v24 = vsel %vm762_vm3, %v464_v26, -1e+30  ;;  %v619_v26 = vcvt.s32.f32 %v587_v6  ;;  %v2985_v6 = vsel %vm2942_vm11, %v2883_v53, -1e+30  ;;  %vm2997_vm3 = vcmp.eq.f32.partialorder %v708_v57, %v2815_v50 }
 0x310   :  { %v900_v36 = vmax.f32 %v2905_v23, %v2907_v24  ;;  %v891_v34 = vmax.f32 %v2985_v6, %v2990_v7  ;;  %vm767_vm6 = vcmp.eq.f32.partialorder %v710_v39, %v2815_v50  ;;  %v682_v8 = vmul.f32 0.03125, %v650_v37 }
 0x311   :  { %v651_v51 = vadd.f32 0.5, %v619_v26  ;;  %vm768_vm7 = vcmp.eq.f32.partialorder %v710_v39, %v2817_v52  ;;  %v592_v53 = vadd.s32 192, %v2809_v28  ;;  %vm772_vm11 = vcmp.eq.f32.partialorder %v712_v58, %v2817_v52 }
 0x312   :  { %901 = vmax.xlane.f32.xlu0 %v900_v36  ;;  %v879_v36 = vmax.f32 %v2931_v16, %v2934_v18  ;;  %v714_v39 = vfloor.f32 %v682_v8 }
 0x313   :  { %v2913_v45 = vpop.f32.mrb[24].mxu1  ;;  %v683_v13 = vmul.f32 0.03125, %v651_v51  ;;  %v620_v51 = vcvt.s32.f32 %v588_v15 }
 0x314   :  { %v2916_v54 = vpop.f32.mrb[25].mxu1  ;;  %v3032_v3 = vsel %vm2997_vm3, %v2913_v45, -1e+30  ;;  %vm776_vm13 = vcmp.eq.f32.partialorder %v714_v39, %v2817_v52 }
 0x315   :  { %v472_v55 = vpop.f32.mrb[26].mxu1  ;;  %v715_v10 = vfloor.f32 %v683_v13  ;;  %v652_v13 = vadd.f32 0.5, %v620_v51 }
 0x316   :  { %v2922_v60 = vsel %vm765_vm4, %v472_v55, -1e+30  ;;  %v474_v63 = vpop.f32.mrb[27].mxu1  ;;  %v589_v55 = vadd.s32 168, %v2809_v28  ;;  %vm3002_vm4 = vcmp.eq.f32.partialorder %v708_v57, %v2817_v52 }
 0x317   :  { %v2924_v2 = vsel %vm766_vm5, %v474_v63, -1e+30  ;;  %vm774_vm5 = vcmp.eq.f32.partialorder %v713_v38, %v2817_v52  ;;  %vm777_vm8 = vcmp.eq.f32.partialorder %v715_v10, %v2815_v50  ;;  %vm778_vm9 = vcmp.eq.f32.partialorder %v715_v10, %v2817_v52 }
 0x318   :  { %v906_v11 = vmax.f32 %v2922_v60, %v2924_v2  ;;  %v621_v22 = vcvt.s32.f32 %v589_v55  ;;  %v684_v51 = vmul.f32 0.03125, %v652_v13 }
 0x31a   :  { %907 = vmax.xlane.f32.xlu0 %v906_v11  ;;  %v653_v55 = vadd.f32 0.5, %v621_v22 }
 0x31b   :  { %v2938_v21 = vpop.f32.mrb[28].mxu1 }
 0x31c   :  { %v2946_v27 = vpop.f32.mrb[29].mxu1  ;;  %v685_v15 = vmul.f32 0.03125, %v653_v55 }
 0x31d   :  { %v482_v35 = vpop.f32.mrb[30].mxu1 }
 0x31e   :  { %v2962_v47 = vsel %vm769_vm10, %v482_v35, -1e+30  ;;  %v484_v48 = vpop.f32.mrb[31].mxu1  ;;  %v590_v35 = vadd.s32 176, %v2809_v28  ;;  %vm3048_vm10 = vcmp.eq.f32.partialorder %v712_v58, %v2815_v50  ;;  %v717_v55 = vfloor.f32 %v685_v15 }
 0x31f   :  { %v2965_v49 = vsel %vm770_vm12, %v484_v48, -1e+30  ;;  %880 = vmax.xlane.f32.xlu1 %v879_v36  ;;  %v3018_v36 = vsel %vm2976_vm15, %v2902_v17, -1e+30  ;;  %vm775_vm12 = vcmp.eq.f32.partialorder %v714_v39, %v2815_v50 }
 0x320   :  { %v912_v41 = vmax.f32 %v2962_v47, %v2965_v49  ;;  %v897_v17 = vmax.f32 %v3010_v29, %v3018_v36  ;;  %v622_v63 = vcvt.s32.f32 %v590_v35  ;;  %v3055_v35 = vsel %vm768_vm7, %v2946_v27, -1e+30 }
 0x321   :  { %vm781_vm14 = vcmp.eq.f32.partialorder %v717_v55, %v2815_v50  ;;  %vm782_vm15 = vcmp.eq.f32.partialorder %v717_v55, %v2817_v52 }
 0x322   :  { %913 = vmax.xlane.f32.xlu0 %v912_v41  ;;  %v591_v41 = vadd.s32 184, %v2809_v28 }
 0x323   :  { %v2992_v11 = vpop.f32.mrb[32].mxu1  ;;  %886 = vmax.xlane.f32.xlu1 %v885_v4  ;;  %v3037_v4 = vsel %vm3002_vm4, %v2916_v54, -1e+30  ;;  %v3045_v54 = vsel %vm767_vm6, %v2938_v21, -1e+30  ;;  %v593_v21 = vadd.s32 200, %v2809_v28 }
 0x324   :  { %v490_v26 = vpop.f32.mrb[33].mxu1  ;;  %v623_v45 = vcvt.s32.f32 %v591_v41  ;;  %v909_v27 = vmax.f32 %v3045_v54, %v3055_v35  ;;  %v3070_v8 = vsel %vm3048_vm10, %v2992_v11, -1e+30 }
 0x325   :  { %v492_v31 = vpop.f32.mrb[34].mxu1  ;;  %3812 = vst [vmem:[#allocation2_spill] sm:$0xff] %v3070_v8  ;;  %v3072_v58 = vsel %vm772_vm11, %v490_v26, -1e+30  ;;  %v625_v13 = vcvt.s32.f32 %v593_v21 }
 0x326   :  { %v3020_v42 = vsel %vm773_vm2, %v492_v31, -1e+30  ;;  %v494_v48 = vpop.f32.mrb[35].mxu1  ;;  %v903_v31 = vmax.f32 %v3032_v3, %v3037_v4  ;;  %v655_v41 = vadd.f32 0.5, %v623_v45  ;;  %3813 = vst [vmem:[#allocation3_spill] sm:$0xff] %v3072_v58  ;;  %v716_v45 = vfloor.f32 %v684_v51 }
 0x327   :  { %v3022_v38 = vsel %vm774_vm5, %v494_v48, -1e+30  ;;  %892 = vmax.xlane.f32.xlu1 %v891_v34  ;;  %v654_v34 = vadd.f32 0.5, %v622_v63 }
 0x328   :  { %v918_v57 = vmax.f32 %v3020_v42, %v3022_v38  ;;  %vm779_vm2 = vcmp.eq.f32.partialorder %v716_v45, %v2815_v50  ;;  %vm780_vm3 = vcmp.eq.f32.partialorder %v716_v45, %v2817_v52 }
 0x329   :  { %v686_v63 = vmul.f32 0.03125, %v654_v34 }
 0x32a   :  { %919 = vmax.xlane.f32.xlu0 %v918_v57 }
 0x32b   :  { %v498_v9 = vpop.f32.mrb[36].mxu1  ;;  %898 = vmax.xlane.f32.xlu1 %v897_v17  ;;  %v624_v17 = vcvt.s32.f32 %v592_v53  ;;  %v718_v34 = vfloor.f32 %v686_v63 }
 0x32c   :  { %v500_v22 = vpop.f32.mrb[37].mxu1  ;;  %v3078_v11 = vsel %vm775_vm12, %v498_v9, -1e+30  ;;  %v595_v9 = vadd.s32 216, %v2809_v28 }
 0x32d   :  { %v502_v25 = vpop.f32.mrb[38].mxu1  ;;  %v656_v56 = vadd.f32 0.5, %v624_v17  ;;  %3814 = vst [vmem:[#allocation4_spill] sm:$0xff] %v3078_v11  ;;  %v3083_v39 = vsel %vm776_vm13, %v500_v22, -1e+30  ;;  %vm783_vm4 = vcmp.eq.f32.partialorder %v718_v34, %v2815_v50  ;;  %vm784_vm5 = vcmp.eq.f32.partialorder %v718_v34, %v2817_v52 }
 0x32e   :  { %v3057_v48 = vsel %vm777_vm8, %v502_v25, -1e+30  ;;  %v504_v37 = vpop.f32.mrb[39].mxu1  ;;  %v687_v25 = vmul.f32 0.03125, %v655_v41  ;;  %3815 = vst [vmem:[#allocation5_spill] sm:$0xff] %v3083_v39  ;;  %v921_v22 = vmax.f32 %v3078_v11, %v3083_v39  ;;  %v596_v34 = vadd.s32 224, %v2809_v28 }
 0x32f   :  { %v3061_v10 = vsel %vm778_vm9, %v504_v37, -1e+30  ;;  %904 = vmax.xlane.f32.xlu1 %v903_v31  ;;  %v915_v31 = vmax.f32 %v3070_v8, %v3072_v58  ;;  %v594_v37 = vadd.s32 208, %v2809_v28 }
 0x330   :  { %v924_v57 = vmax.f32 %v3057_v48, %v3061_v10  ;;  %v719_v17 = vfloor.f32 %v687_v25 }
 0x331   :  { %v626_v63 = vcvt.s32.f32 %v594_v37 }
 0x332   :  { %925 = vmax.xlane.f32.xlu0 %v924_v57  ;;  %v657_v57 = vadd.f32 0.5, %v625_v13  ;;  %vm785_vm6 = vcmp.eq.f32.partialorder %v719_v17, %v2815_v50  ;;  %vm786_vm7 = vcmp.eq.f32.partialorder %v719_v17, %v2817_v52 }
 0x333   :  { %v508_v15 = vpop.f32.mrb[40].mxu1  ;;  %910 = vmax.xlane.f32.xlu1 %v909_v27  ;;  %v688_v27 = vmul.f32 0.03125, %v656_v56 }
 0x334   :  { %v510_v53 = vpop.f32.mrb[41].mxu1  ;;  %v3097_v13 = vsel %vm779_vm2, %v508_v15, -1e+30  ;;  %v689_v45 = vmul.f32 0.03125, %v657_v57 }
 0x335   :  { %v512_v26 = vpop.f32.mrb[42].mxu1  ;;  %3816 = vst [vmem:[#allocation6_spill] sm:$0xff] %v3097_v13  ;;  %v720_v56 = vfloor.f32 %v688_v27  ;;  %v597_v27 = vadd.s32 232, %v2809_v28 }
 0x336   :  { %v3085_v21 = vsel %vm781_vm14, %v512_v26, -1e+30  ;;  %v514_v51 = vpop.f32.mrb[43].mxu1  ;;  %v3099_v26 = vsel %vm780_vm3, %v510_v53, -1e+30 }
 0x337   :  { %v3089_v55 = vsel %vm782_vm15, %v514_v51, -1e+30  ;;  %916 = vmax.xlane.f32.xlu1 %v915_v31  ;;  %3817 = vst [vmem:[#allocation7_spill] sm:$0xff] %v3099_v26  ;;  %v627_v51 = vcvt.s32.f32 %v595_v9  ;;  %v927_v53 = vmax.f32 %v3097_v13, %v3099_v26  ;;  %vm787_vm8 = vcmp.eq.f32.partialorder %v720_v56, %v2815_v50 }
 0x338   :  { %v930_v41 = vmax.f32 %v3085_v21, %v3089_v55  ;;  %vm788_vm9 = vcmp.eq.f32.partialorder %v720_v56, %v2817_v52 }
 0x339   :  { %v659_v17 = vadd.f32 0.5, %v627_v51 }
 0x33a   :  { %931 = vmax.xlane.f32.xlu0 %v930_v41  ;;  %v658_v41 = vadd.f32 0.5, %v626_v63  ;;  %v628_v63 = vcvt.s32.f32 %v596_v34 }
 0x33b   :  { %v518_v31 = vpop.f32.mrb[44].mxu1  ;;  %922 = vmax.xlane.f32.xlu1 %v921_v22  ;;  %v721_v22 = vfloor.f32 %v689_v45  ;;  %v691_v45 = vmul.f32 0.03125, %v659_v17 }
 0x33c   :  { %v3102_v58 = vsel %vm783_vm4, %v518_v31, -1e+30  ;;  %v520_v25 = vpop.f32.mrb[45].mxu1 }
 0x33d   :  { %3818 = vst [vmem:[#allocation8_spill] sm:$0xff] %v3102_v58  ;;  %v3106_v37 = vsel %vm784_vm5, %v520_v25, -1e+30  ;;  %v522_v15 = vpop.f32.mrb[46].mxu1  ;;  %v690_v25 = vmul.f32 0.03125, %v658_v41  ;;  %vm789_vm10 = vcmp.eq.f32.partialorder %v721_v22, %v2815_v50  ;;  %vm790_vm11 = vcmp.eq.f32.partialorder %v721_v22, %v2817_v52 }
 0x33e   :  { %3819 = vst [vmem:[#allocation9_spill] sm:$0xff] %v3106_v37  ;;  %v524_v57 = vpop.f32.mrb[47].mxu1  ;;  %v933_v9 = vmax.f32 %v3102_v58, %v3106_v37  ;;  %v3113_v31 = vsel %vm785_vm6, %v522_v15, -1e+30  ;;  %v629_v15 = vcvt.s32.f32 %v597_v27  ;;  %v723_v17 = vfloor.f32 %v691_v45 }
 0x33f   :  { %v3115_v39 = vsel %vm786_vm7, %v524_v57, -1e+30  ;;  %928 = vmax.xlane.f32.xlu1 %v927_v53  ;;  %v722_v34 = vfloor.f32 %v690_v25 }
 0x340   :  { %934 = vmax.xlane.f32.xlu0 %v933_v9  ;;  %v936_v26 = vmax.f32 %v3113_v31, %v3115_v39  ;;  %v660_v9 = vadd.f32 0.5, %v628_v63  ;;  %vm793_vm14 = vcmp.eq.f32.partialorder %v723_v17, %v2815_v50  ;;  %vm794_vm15 = vcmp.eq.f32.partialorder %v723_v17, %v2817_v52 }
 0x341   :  { %vm791_vm12 = vcmp.eq.f32.partialorder %v722_v34, %v2815_v50  ;;  %vm792_vm13 = vcmp.eq.f32.partialorder %v722_v34, %v2817_v52 }
 0x342   :  { %v692_v22 = vmul.f32 0.03125, %v660_v9 }
 0x343   :  { %v528_v37 = vpop.f32.mrb[48].mxu1 }
 0x344   :  { %v3123_v57 = vsel %vm787_vm8, %v528_v37, -1e+30  ;;  %937 = vmax.xlane.f32.xlu0 %v936_v26  ;;  %v530_v51 = vpop.f32.mrb[49].mxu1  ;;  %v661_v37 = vadd.f32 0.5, %v629_v15 }
 0x345   :  { %3820 = vst [vmem:[#allocation10_spill] sm:$0xff] %v3123_v57  ;;  %v3126_v53 = vsel %vm788_vm9, %v530_v51, -1e+30  ;;  %v532_v41 = vpop.f32.mrb[50].mxu1  ;;  %v724_v51 = vfloor.f32 %v692_v22 }
 0x346   :  { %3821 = vst [vmem:[#allocation11_spill] sm:$0xff] %v3126_v53  ;;  %v3128_v58 = vsel %vm789_vm10, %v532_v41, -1e+30  ;;  %v534_v13 = vpop.f32.mrb[51].mxu1  ;;  %v939_v56 = vmax.f32 %v3123_v57, %v3126_v53  ;;  %v693_v25 = vmul.f32 0.03125, %v661_v37  ;;  %vm1644_vm10 = vcmask 261120  }
 0x347   :  { %v3132_v11 = vsel %vm790_vm11, %v534_v13, -1e+30  ;;  %vm795_vm2 = vcmp.eq.f32.partialorder %v724_v51, %v2815_v50  ;;  %vm796_vm3 = vcmp.eq.f32.partialorder %v724_v51, %v2817_v52  ;;  %vm1653_vm11 = vcmask 392192  }
 0x348   :  { %940 = vmax.xlane.f32.xlu1 %v939_v56  ;;  %v942_v26 = vmax.f32 %v3128_v58, %v3132_v11 }
 0x34a   :  { %943 = vmax.xlane.f32.xlu0 %v942_v26  ;;  %v725_v26 = vfloor.f32 %v693_v25 }
 0x34b   :  { %v538_v27 = vpop.f32.mrb[52].mxu1 }
 0x34c   :  { %v3139_v63 = vsel %vm791_vm12, %v538_v27, -1e+30  ;;  %v540_v13 = vpop.f32.mrb[53].mxu1  ;;  %vm797_vm4 = vcmp.eq.f32.partialorder %v725_v26, %v2815_v50  ;;  %vm798_vm5 = vcmp.eq.f32.partialorder %v725_v26, %v2817_v52 }
 0x34d   :  { %3822 = vst [vmem:[#allocation12_spill] sm:$0xff] %v3139_v63  ;;  %v3142_v45 = vsel %vm792_vm13, %v540_v13, -1e+30  ;;  %v542_v15 = vpop.f32.mrb[54].mxu1 }
 0x34e   :  { %3823 = vst [vmem:[#allocation13_spill] sm:$0xff] %v3142_v45  ;;  %v3144_v41 = vsel %vm793_vm14, %v542_v15, -1e+30  ;;  %v544_v56 = vpop.f32.mrb[55].mxu1  ;;  %v945_v9 = vmax.f32 %v3139_v63, %v3142_v45 }
 0x34f   :  { %v3148_v34 = vsel %vm794_vm15, %v544_v56, -1e+30 }
 0x350   :  { %946 = vmax.xlane.f32.xlu1 %v945_v9  ;;  %v948_v37 = vmax.f32 %v3144_v41, %v3148_v34 }
 0x352   :  { %949 = vmax.xlane.f32.xlu0 %v948_v37 }
 0x353   :  { %v548_v17 = vpop.f32.mrb[56].mxu1 }
 0x354   :  { %v3155_v22 = vsel %vm795_vm2, %v548_v17, -1e+30  ;;  %v550_v27 = vpop.f32.mrb[57].mxu1 }
 0x355   :  { %3824 = vst [vmem:[#allocation14_spill] sm:$0xff] %v3155_v22  ;;  %v3158_v13 = vsel %vm796_vm3, %v550_v27, -1e+30  ;;  %v552_v25 = vpop.f32.mrb[58].mxu1 }
 0x356   :  { %3825 = vst [vmem:[#allocation15_spill] sm:$0xff] %v3158_v13  ;;  %v3160_v15 = vsel %vm797_vm4, %v552_v25, -1e+30  ;;  %v554_v56 = vpop.f32.mrb[59].mxu1  ;;  %v951_v9 = vmax.f32 %v3155_v22, %v3158_v13 }
 0x357   :  { %v3164_v37 = vsel %vm798_vm5, %v554_v56, -1e+30 }
 0x358   :  { %952 = vmax.xlane.f32.xlu0 %v951_v9  ;;  %v954_v51 = vmax.f32 %v3160_v15, %v3164_v37 }
 0x35a   :  { %955 = vmax.xlane.f32.xlu1 %v954_v51 }
 0x35b   :  { %v3168_v17 = vpop.f32.mrb[60].mxu1 }
 0x35c   :  { %3826 = vst [vmem:[#allocation16_spill] sm:$0xff] %v3168_v17  ;;  %v3170_v45 = vpop.f32.mrb[61].mxu1 }
 0x35d   :  { %3827 = vst [vmem:[#allocation17_spill] sm:$0xff] %v3170_v45  ;;  %v3172_v26 = vpop.f32.mrb[62].mxu1 }
 0x35e   :  { %v3174_v27 = vpop.f32.mrb[63].mxu1 }
 0x375   :  { %v869_v25 = vpop.xlane.xlu0 %868 }
 0x376   :  { %v963_v63 = vsub.f32 %v2823_v59, %v869_v25  ;;  %v964_v13 = vsub.f32 %v2826_v62, %v869_v25 }
 0x377   :  { %v872_v56 = vpop.xlane.xlu1 %871 }
 0x378   :  { %v1027_v22 = vmul.f32 1.442695, %v963_v63  ;;  %v1029_v9 = vmul.f32 1.442695, %v964_v13  ;;  %v965_v53 = vsub.f32 %v2828_v1, %v872_v56  ;;  %v966_v51 = vsub.f32 %v2832_v5, %v872_v56 }
 0x37a   :  { %2315 = vpow2.f32 %v1027_v22  ;;  %v1031_v57 = vmul.f32 1.442695, %v965_v53  ;;  %v1033_v8 = vmul.f32 1.442695, %v966_v51 }
 0x37b   :  { %2317 = vpow2.f32 %v1029_v9  ;;  %v214_v45 = vpop.permute.xlu1 %213 }
 0x37c   :  { %2319 = vpow2.f32 %v1031_v57  ;;  %2100 = vmatpush3.bf16.msra.mxu0 %v214_v45 }
 0x37d   :  { %2321 = vpow2.f32 %v1033_v8  ;;  %v875_v17 = vpop.xlane.xlu0 %874 }
 0x37e   :  { %v967_v59 = vsub.f32 %v2839_v12, %v875_v17  ;;  %v968_v62 = vsub.f32 %v2843_v14, %v875_v17 }
 0x380   :  { %v1035_v25 = vmul.f32 1.442695, %v967_v59  ;;  %v1037_v63 = vmul.f32 1.442695, %v968_v62 }
 0x381   :  { %v878_v13 = vpop.xlane.xlu0 %877 }
 0x382   :  { %2323 = vpow2.f32 %v1035_v25  ;;  %v969_v1 = vsub.f32 %v2847_v19, %v878_v13  ;;  %v970_v5 = vsub.f32 %v2849_v20, %v878_v13 }
 0x383   :  { %2325 = vpow2.f32 %v1037_v63 }
 0x384   :  { %v3184_v53 = vpop.eup %2315  ;;  %v1039_v22 = vmul.f32 1.442695, %v969_v1  ;;  %v1041_v57 = vmul.f32 1.442695, %v970_v5 }
 0x385   :  { %v3186_v45 = vpop.eup %2317 }
 0x386   :  { %v3188_v8 = vpop.eup %2319  ;;  %2327 = vpow2.f32 %v1039_v22  ;;  %v1155_v12 = vadd.f32 %v3186_v45, %v3184_v53 }
 0x387   :  { %v3192_v14 = vpop.eup %2321  ;;  %2329 = vpow2.f32 %v1041_v57  ;;  %v884_v62 = vpop.xlane.xlu0 %883 }
 0x388   :  { %1156 = vadd.xlane.f32.xlu0 %v1155_v12  ;;  %v1158_v19 = vadd.f32 %v3192_v14, %v3188_v8  ;;  %v973_v25 = vsub.f32 %v2860_v30, %v884_v62  ;;  %v974_v63 = vsub.f32 %v2862_v32, %v884_v62 }
 0x38a   :  { %v1047_v13 = vmul.f32 1.442695, %v973_v25  ;;  %v1049_v1 = vmul.f32 1.442695, %v974_v63 }
 0x38c   :  { %v3196_v20 = vpop.eup %2323  ;;  %1159 = vadd.xlane.f32.xlu0 %v1158_v19  ;;  %2331 = vpow2.f32 %v1047_v13 }
 0x38d   :  { %3828 = vst [vmem:[#allocation18_spill] sm:$0xff] %v3196_v20  ;;  %v3198_v17 = vpop.eup %2325  ;;  %2333 = vpow2.f32 %v1049_v1 }
 0x38e   :  { %v1161_v56 = vadd.f32 %v3198_v17, %v3196_v20 }
 0x38f   :  { %v890_v22 = vpop.xlane.xlu0 %889 }
 0x390   :  { %v3202_v9 = vpop.eup %2327  ;;  %1162 = vadd.xlane.f32.xlu1 %v1161_v56  ;;  %v978_v25 = vsub.f32 %v2877_v46, %v890_v22 }
 0x391   :  { %3829 = vst [vmem:[#allocation19_spill] sm:$0xff] %v3202_v9  ;;  %v3204_v51 = vpop.eup %2329 }
 0x392   :  { %v1164_v59 = vadd.f32 %v3204_v51, %v3202_v9  ;;  %v977_v9 = vsub.f32 %v2875_v43, %v890_v22 }
 0x394   :  { %1165 = vadd.xlane.f32.xlu1 %v1164_v59  ;;  %v599_v59 = vadd.s32 248, %v2809_v28  ;;  %v1055_v13 = vmul.f32 1.442695, %v977_v9 }
 0x396   :  { %v631_v63 = vcvt.s32.f32 %v599_v59 }
 0x397   :  { %v896_v30 = vpop.xlane.xlu0 %895 }
 0x398   :  { %v663_v43 = vadd.f32 0.5, %v631_v63  ;;  %v982_v46 = vsub.f32 %v2892_v0, %v896_v30 }
 0x3a2   :  { %215 = vrot.lane.b32.xlu0 %v2639_v44, %s2533_s17 }
 0x3ac   :  { %v881_v5 = vpop.xlane.xlu1 %880 }
 0x3ad   :  { %v971_v57 = vsub.f32 %v2931_v16, %v881_v5  ;;  %v972_v12 = vsub.f32 %v2934_v18, %v881_v5  ;;  %v902_v5 = vpop.xlane.xlu0 %901 }
 0x3ae   :  { %v985_v59 = vsub.f32 %v2905_v23, %v902_v5 }
 0x3af   :  { %v1043_v19 = vmul.f32 1.442695, %v971_v57  ;;  %v1045_v56 = vmul.f32 1.442695, %v972_v12  ;;  %v1057_v57 = vmul.f32 1.442695, %v978_v25  ;;  %v3221_v12 = vpop.eup %2331 }
 0x3b0   :  { %v887_v20 = vpop.xlane.xlu1 %886  ;;  %v1065_v25 = vmul.f32 1.442695, %v982_v46  ;;  %v1071_v23 = vmul.f32 1.442695, %v985_v59 }
 0x3b1   :  { %2335 = vpow2.f32 %v1043_v19  ;;  %v975_v32 = vsub.f32 %v2950_v33, %v887_v20  ;;  %v976_v62 = vsub.f32 %v2955_v40, %v887_v20  ;;  %v981_v33 = vsub.f32 %v2890_v61, %v896_v30  ;;  %v908_v40 = vpop.xlane.xlu0 %907  ;;  %v3224_v20 = vpop.eup %2333 }
 0x3b2   :  { %2337 = vpow2.f32 %v1045_v56  ;;  %v695_v19 = vmul.f32 0.03125, %v663_v43  ;;  %v1170_v0 = vadd.f32 %v3224_v20, %v3221_v12 }
 0x3b3   :  { %v1051_v16 = vmul.f32 1.442695, %v975_v32  ;;  %v1053_v18 = vmul.f32 1.442695, %v976_v62  ;;  %v1063_v56 = vmul.f32 1.442695, %v981_v33  ;;  %v990_v33 = vsub.f32 %v2924_v2, %v908_v40 }
 0x3b4   :  { %v3219_v1 = vpop.xlane.xlu1 %892 }
 0x3b5   :  { %2339 = vpow2.f32 %v1051_v16  ;;  %v914_v32 = vpop.xlane.xlu0 %913  ;;  %v986_v16 = vsub.f32 %v2907_v24, %v902_v5  ;;  %v1081_v2 = vmul.f32 1.442695, %v990_v33 }
 0x3b6   :  { %2341 = vpow2.f32 %v1053_v18  ;;  %v727_v18 = vfloor.f32 %v695_v19 }
 0x3b7   :  { %2343 = vpow2.f32 %v1055_v13  ;;  %v989_v13 = vsub.f32 %v2922_v60, %v908_v40  ;;  %v1073_v43 = vmul.f32 1.442695, %v986_v16  ;;  %v994_v40 = vsub.f32 %v2965_v49, %v914_v32 }
 0x3b8   :  { %2345 = vpow2.f32 %v1057_v57  ;;  %v3232_v62 = vpop.xlane.xlu1 %898  ;;  %vm801_vm6 = vcmp.eq.f32.partialorder %v727_v18, %v2815_v50  ;;  %vm802_vm7 = vcmp.eq.f32.partialorder %v727_v18, %v2817_v52 }
 0x3b9   :  { %2347 = vpow2.f32 %v1063_v56  ;;  %v920_v57 = vpop.xlane.xlu0 %919  ;;  %v1079_v60 = vmul.f32 1.442695, %v989_v13  ;;  %v993_v56 = vsub.f32 %v2962_v47, %v914_v32  ;;  %v3263_v16 = vsel %vm802_vm7, %v3174_v27, -1e+30 }
 0x3ba   :  { %2349 = vpow2.f32 %v1065_v25  ;;  %v3260_v25 = vsel %vm801_vm6, %v3172_v26, -1e+30  ;;  %v997_v18 = vsub.f32 %v3020_v42, %v920_v57  ;;  %v1089_v13 = vmul.f32 1.442695, %v994_v40 }
 0x3bb   :  { %v3227_v22 = vpop.eup %2335  ;;  %2351 = vpow2.f32 %v1071_v23  ;;  %v998_v49 = vsub.f32 %v3022_v38, %v920_v57  ;;  %v960_v26 = vmax.f32 %v3260_v25, %v3263_v16 }
 0x3bc   :  { %v3229_v9 = vpop.eup %2337  ;;  %v3247_v5 = vpop.xlane.xlu1 %904  ;;  %2353 = vpow2.f32 %v1073_v43  ;;  %v1095_v27 = vmul.f32 1.442695, %v997_v18 }
 0x3bd   :  { %v1167_v61 = vadd.f32 %v3229_v9, %v3227_v22  ;;  %2355 = vpow2.f32 %v1079_v60 }
 0x3be   :  { %2357 = vpow2.f32 %v1081_v2 }
 0x3bf   :  { %1168 = vadd.xlane.f32.xlu1 %v1167_v61  ;;  %v3239_v30 = vpop.eup %2339  ;;  %v926_v59 = vpop.xlane.xlu0 %925 }
 0x3c0   :  { %v3241_v63 = vpop.eup %2341  ;;  %v3266_v47 = vpop.xlane.xlu1 %910  ;;  %v1001_v33 = vsub.f32 %v3057_v48, %v926_v59  ;;  %v1002_v60 = vsub.f32 %v3061_v10, %v926_v59 }
 0x3c1   :  { %1171 = vadd.xlane.f32.xlu0 %v1170_v0  ;;  %v3245_v24 = vpop.eup %2343  ;;  %v1173_v46 = vadd.f32 %v3241_v63, %v3239_v30  ;;  %v1087_v0 = vmul.f32 1.442695, %v993_v56 }
 0x3c2   :  { %v3251_v19 = vpop.eup %2345  ;;  %v1103_v48 = vmul.f32 1.442695, %v1001_v33 }
 0x3c3   :  { %v1176_v61 = vadd.f32 %v3251_v19, %v3245_v24  ;;  %v3269_v32 = vpop.eup %2347  ;;  %2359 = vpow2.f32 %v1087_v0 }
 0x3c4   :  { %v3273_v43 = vpop.eup %2349  ;;  %2361 = vpow2.f32 %v1089_v13  ;;  %v3281_v38 = vpop.xlane.xlu1 %916 }
 0x3c5   :  { %1174 = vadd.xlane.f32.xlu0 %v1173_v46  ;;  %v1097_v46 = vmul.f32 1.442695, %v998_v49  ;;  %v3279_v56 = vpop.eup %2351  ;;  %v1182_v57 = vadd.f32 %v3273_v43, %v3269_v32  ;;  %2363 = vpow2.f32 %v1095_v27 }
 0x3c6   :  { %v3285_v2 = vpop.eup %2353 }
 0x3c7   :  { %v932_v23 = vpop.xlane.xlu0 %931  ;;  %2365 = vpow2.f32 %v1097_v46  ;;  %v3291_v0 = vpop.eup %2355  ;;  %v1188_v18 = vadd.f32 %v3285_v2, %v3279_v56 }
 0x3c8   :  { %v1005_v40 = vsub.f32 %v3085_v21, %v932_v23  ;;  %v1006_v10 = vsub.f32 %v3089_v55, %v932_v23  ;;  %v3295_v13 = vpop.eup %2357  ;;  %2367 = vpow2.f32 %v1103_v48  ;;  %v598_v23 = vadd.s32 240, %v2809_v28 }
 0x3c9   :  { %1177 = vadd.xlane.f32.xlu0 %v1176_v61  ;;  %v1105_v61 = vmul.f32 1.442695, %v1002_v60  ;;  %v1194_v46 = vadd.f32 %v3295_v13, %v3291_v0 }
 0x3ca   :  { %v1111_v49 = vmul.f32 1.442695, %v1005_v40  ;;  %v1113_v21 = vmul.f32 1.442695, %v1006_v10 }
 0x3cb   :  { %2369 = vpow2.f32 %v1105_v61  ;;  %v630_v61 = vcvt.s32.f32 %v598_v23 }
 0x3cc   :  { %2371 = vpow2.f32 %v1111_v49 }
 0x3cd   :  { %961 = vmax.xlane.f32.xlu0 %v960_v26  ;;  %v3276_v42 = vpop.xlane.xlu0 %934  ;;  %v3301_v55 = vpop.eup %2359  ;;  %2373 = vpow2.f32 %v1113_v21 }
 0x3ce   :  { %v3306_v60 = vpop.eup %2361 }
 0x3cf   :  { %v1200_v28 = vadd.f32 %v3306_v60, %v3301_v55 }
 0x3d0   :  { %239 = vrot.lane.b32.xlu1 %v2639_v44, %s2535_s19  ;;  %v3297_v44 = vpop.xlane.xlu1 %922 }
 0x3d1   :  { %1183 = vadd.xlane.f32.xlu0 %v1182_v57  ;;  %v938_v59 = vpop.xlane.xlu0 %937 }
 0x3d2   :  { %v1009_v26 = vsub.f32 %v3113_v31, %v938_v59  ;;  %v1010_v27 = vsub.f32 %v3115_v39, %v938_v59  ;;  %v3310_v39 = vpop.eup %2363 }
 0x3d3   :  { %3830 = vst [vmem:[#allocation20_spill] sm:$0xff] %v3310_v39  ;;  %v3316_v59 = vpop.eup %2365 }
 0x3d4   :  { %v1119_v57 = vmul.f32 1.442695, %v1009_v26  ;;  %v1121_v31 = vmul.f32 1.442695, %v1010_v27  ;;  %v3312_v10 = vpop.xlane.xlu1 %928  ;;  %v3318_v49 = vpop.eup %2367  ;;  %v662_v26 = vadd.f32 0.5, %v630_v61  ;;  %v1206_v27 = vadd.f32 %v3316_v59, %v3310_v39 }
 0x3d5   :  { %1189 = vadd.xlane.f32.xlu0 %v1188_v18  ;;  %v3324_v23 = vpop.eup %2369 }
 0x3d6   :  { %2375 = vpow2.f32 %v1119_v57  ;;  %v694_v39 = vmul.f32 0.03125, %v662_v26 }
 0x3d7   :  { %v944_v33 = vpop.xlane.xlu0 %943  ;;  %2377 = vpow2.f32 %v1121_v31  ;;  %v983_v31 = vsub.f32 %v3010_v29, %v3232_v62 }
 0x3d8   :  { %v1013_v48 = vsub.f32 %v3128_v58, %v944_v33  ;;  %v1014_v40 = vsub.f32 %v3132_v11, %v944_v33  ;;  %v3320_v21 = vpop.xlane.xlu1 %940  ;;  %v979_v33 = vsub.f32 %v2985_v6, %v3219_v1  ;;  %v984_v6 = vsub.f32 %v3018_v36, %v3232_v62 }
 0x3d9   :  { %1195 = vadd.xlane.f32.xlu0 %v1194_v46  ;;  %v1067_v29 = vmul.f32 1.442695, %v983_v31 }
 0x3da   :  { %v1127_v18 = vmul.f32 1.442695, %v1013_v48  ;;  %v1129_v58 = vmul.f32 1.442695, %v1014_v40  ;;  %v980_v48 = vsub.f32 %v2990_v7, %v3219_v1  ;;  %v1059_v1 = vmul.f32 1.442695, %v979_v33 }
 0x3db   :  { %v1069_v26 = vmul.f32 1.442695, %v984_v6  ;;  %v3835_v6 = vld [vmem:[#allocation16_spill] sm:$0xff] }
 0x3dc   :  { %2379 = vpow2.f32 %v1127_v18  ;;  %v1061_v18 = vmul.f32 1.442695, %v980_v48  ;;  %v988_v48 = vsub.f32 %v3037_v4, %v3247_v5  ;;  %v991_v4 = vsub.f32 %v3045_v54, %v3266_v47 }
 0x3dd   :  { %1201 = vadd.xlane.f32.xlu0 %v1200_v28  ;;  %2381 = vpow2.f32 %v1129_v58  ;;  %v3334_v28 = vpop.eup %2371 }
 0x3de   :  { %v3342_v7 = vpop.eup %2373  ;;  %v1083_v54 = vmul.f32 1.442695, %v991_v4  ;;  %v3841_v4 = vld [vmem:[#allocation5_spill] sm:$0xff] }
 0x3df   :  { %v950_v11 = vpop.xlane.xlu0 %949  ;;  %v1218_v36 = vadd.f32 %v3342_v7, %v3334_v28 }
 0x3e0   :  { %v1017_v46 = vsub.f32 %v3144_v41, %v950_v11  ;;  %v1018_v57 = vsub.f32 %v3148_v34, %v950_v11  ;;  %v3338_v41 = vpop.xlane.xlu1 %946  ;;  %v1212_v34 = vadd.f32 %v3324_v23, %v3318_v49  ;;  %v3344_v58 = vpop.eup %2375  ;;  %v726_v11 = vfloor.f32 %v694_v39 }
 0x3e1   :  { %1207 = vadd.xlane.f32.xlu0 %v1206_v27  ;;  %3831 = vst [vmem:[#allocation21_spill] sm:$0xff] %v3344_v58  ;;  %v3348_v62 = vpop.eup %2377 }
 0x3e2   :  { %v1135_v40 = vmul.f32 1.442695, %v1017_v46  ;;  %v1137_v61 = vmul.f32 1.442695, %v1018_v57  ;;  %v987_v46 = vsub.f32 %v3032_v3, %v3247_v5  ;;  %vm799_vm8 = vcmp.eq.f32.partialorder %v726_v11, %v2815_v50 }
 0x3e3   :  { %v1224_v3 = vadd.f32 %v3348_v62, %v3344_v58  ;;  %vm800_vm9 = vcmp.eq.f32.partialorder %v726_v11, %v2817_v52  ;;  %v992_v5 = vsub.f32 %v3055_v35, %v3266_v47  ;;  %v3838_v11 = vld [vmem:[#allocation2_spill] sm:$0xff] }
 0x3e4   :  { %2383 = vpow2.f32 %v1135_v40  ;;  %v995_v35 = vsub.f32 %v3838_v11, %v3281_v38 }
 0x3e5   :  { %1213 = vadd.xlane.f32.xlu0 %v1212_v34  ;;  %2385 = vpow2.f32 %v1137_v61  ;;  %v3371_v34 = vsel %vm799_vm8, %v3835_v6, -1e+30  ;;  %v1085_v47 = vmul.f32 1.442695, %v992_v5 }
 0x3e6   :  { %2387 = vpow2.f32 %v1059_v1  ;;  %v3356_v40 = vpop.eup %2379  ;;  %v3836_v1 = vld [vmem:[#allocation17_spill] sm:$0xff] }
 0x3e7   :  { %v956_v27 = vpop.xlane.xlu1 %955  ;;  %2389 = vpow2.f32 %v1061_v18  ;;  %3832 = vst [vmem:[#allocation22_spill] sm:$0xff] %v3356_v40  ;;  %v3361_v61 = vpop.eup %2381  ;;  %v3374_v18 = vsel %vm800_vm9, %v3836_v1, -1e+30 }
 0x3e8   :  { %v1021_v33 = vsub.f32 %v3160_v15, %v956_v27  ;;  %v1022_v57 = vsub.f32 %v3164_v37, %v956_v27  ;;  %2391 = vpow2.f32 %v1067_v29  ;;  %3833 = vst [vmem:[#allocation23_spill] sm:$0xff] %v3361_v61  ;;  %v1075_v15 = vmul.f32 1.442695, %v987_v46 }
 0x3e9   :  { %1219 = vadd.xlane.f32.xlu0 %v1218_v36  ;;  %2393 = vpow2.f32 %v1069_v26  ;;  %v1077_v37 = vmul.f32 1.442695, %v988_v48  ;;  %v1230_v52 = vadd.f32 %v3361_v61, %v3356_v40  ;;  %v3839_v26 = vld [vmem:[#allocation3_spill] sm:$0xff]  ;;  %v957_v46 = vmax.f32 %v3371_v34, %v3374_v18 }
 0x3ea   :  { %v1143_v39 = vmul.f32 1.442695, %v1021_v33  ;;  %v1145_v31 = vmul.f32 1.442695, %v1022_v57  ;;  %v996_v27 = vsub.f32 %v3839_v26, %v3281_v38 }
 0x3ec   :  { %2395 = vpow2.f32 %v1143_v39  ;;  %v1091_v39 = vmul.f32 1.442695, %v995_v35 }
 0x3ed   :  { %2397 = vpow2.f32 %v1145_v31  ;;  %1225 = vadd.xlane.f32.xlu0 %v1224_v3  ;;  %v3840_v31 = vld [vmem:[#allocation4_spill] sm:$0xff] }
 0x3ee   :  { %v3368_v50 = vpop.eup %2383  ;;  %2399 = vpow2.f32 %v1075_v15  ;;  %v999_v3 = vsub.f32 %v3840_v31, %v3297_v44  ;;  %v1093_v15 = vmul.f32 1.442695, %v996_v27  ;;  %v3846_v31 = vld [vmem:[#allocation8_spill] sm:$0xff] }
 0x3ef   :  { %3834 = vst [vmem:[#allocation24_spill] sm:$0xff] %v3368_v50  ;;  %v3378_v29 = vpop.eup %2385  ;;  %2401 = vpow2.f32 %v1077_v37  ;;  %v1000_v37 = vsub.f32 %v3841_v4, %v3297_v44  ;;  %v3845_v44 = vld [vmem:[#allocation7_spill] sm:$0xff]  ;;  %v3847_v4 = vld [vmem:[#allocation9_spill] sm:$0xff] }
 0x3f0   :  { %3837 = vst [vmem:[#allocation16_spill] sm:$0xff] %v3378_v29  ;;  %v3384_v36 = vpop.eup %2387  ;;  %v1236_v57 = vadd.f32 %v3378_v29, %v3368_v50  ;;  %2403 = vpow2.f32 %v1083_v54  ;;  %v3844_v54 = vld [vmem:[#allocation6_spill] sm:$0xff]  ;;  %v1004_v26 = vsub.f32 %v3845_v44, %v3312_v10 }
 0x3f1   :  { %1231 = vadd.xlane.f32.xlu0 %v1230_v52  ;;  %v3388_v33 = vpop.eup %2389  ;;  %2405 = vpow2.f32 %v1085_v47  ;;  %v1099_v52 = vmul.f32 1.442695, %v999_v3  ;;  %v1003_v11 = vsub.f32 %v3844_v54, %v3312_v10  ;;  %v1101_v47 = vmul.f32 1.442695, %v1000_v37 }
 0x3f2   :  { %v3392_v48 = vpop.eup %2391  ;;  %v1179_v6 = vadd.f32 %v3388_v33, %v3384_v36  ;;  %2407 = vpow2.f32 %v1091_v39  ;;  %v1007_v3 = vsub.f32 %v3846_v31, %v3276_v42  ;;  %v1008_v37 = vsub.f32 %v3847_v4, %v3276_v42 }
 0x3f3   :  { %v3396_v38 = vpop.eup %2393  ;;  %2409 = vpow2.f32 %v1093_v15  ;;  %v1107_v39 = vmul.f32 1.442695, %v1003_v11  ;;  %v1109_v15 = vmul.f32 1.442695, %v1004_v26 }
 0x3f4   :  { %958 = vmax.xlane.f32.xlu1 %v957_v46  ;;  %v1185_v46 = vadd.f32 %v3396_v38, %v3392_v48  ;;  %2411 = vpow2.f32 %v1099_v52  ;;  %v3848_v52 = vld [vmem:[#allocation10_spill] sm:$0xff]  ;;  %v1117_v44 = vmul.f32 1.442695, %v1008_v37 }
 0x3f5   :  { %1237 = vadd.xlane.f32.xlu0 %v1236_v57  ;;  %2413 = vpow2.f32 %v1101_v47  ;;  %v1011_v11 = vsub.f32 %v3848_v52, %v3320_v21  ;;  %v3849_v47 = vld [vmem:[#allocation11_spill] sm:$0xff]  ;;  %v953_v52 = vpop.xlane.xlu0 %952 }
 0x3f6   :  { %v3400_v5 = vpop.eup %2395  ;;  %2415 = vpow2.f32 %v1107_v39  ;;  %v1012_v26 = vsub.f32 %v3849_v47, %v3320_v21  ;;  %v3850_v39 = vld [vmem:[#allocation12_spill] sm:$0xff] }
 0x3f7   :  { %3842 = vst [vmem:[#allocation17_spill] sm:$0xff] %v3400_v5  ;;  %v3404_v1 = vpop.eup %2397  ;;  %2417 = vpow2.f32 %v1109_v15  ;;  %v1123_v4 = vmul.f32 1.442695, %v1011_v11  ;;  %v3851_v15 = vld [vmem:[#allocation13_spill] sm:$0xff]  ;;  %v3852_v11 = vld [vmem:[#allocation14_spill] sm:$0xff] }
 0x3f8   :  { %3843 = vst [vmem:[#allocation2_spill] sm:$0xff] %v3404_v1  ;;  %1180 = vadd.xlane.f32.xlu1 %v1179_v6  ;;  %v1242_v35 = vadd.f32 %v3404_v1, %v3400_v5  ;;  %v3412_v27 = vpop.eup %2399  ;;  %v1016_v37 = vsub.f32 %v3851_v15, %v3338_v41  ;;  %v1019_v1 = vsub.f32 %v3852_v11, %v953_v52 }
 0x3f9   :  { %v3416_v57 = vpop.eup %2401 }
 0x3fa   :  { %1243 = vadd.xlane.f32.xlu0 %v1242_v35  ;;  %v3422_v10 = vpop.eup %2403  ;;  %v1191_v6 = vadd.f32 %v3416_v57, %v3412_v27  ;;  %v1115_v35 = vmul.f32 1.442695, %v1007_v3  ;;  %v1015_v3 = vsub.f32 %v3850_v39, %v3338_v41  ;;  %v1139_v50 = vmul.f32 1.442695, %v1019_v1 }
 0x3fb   :  { %v3426_v54 = vpop.eup %2405 }
 0x3fc   :  { %1186 = vadd.xlane.f32.xlu1 %v1185_v46  ;;  %v3432_v46 = vpop.eup %2407  ;;  %v1197_v42 = vadd.f32 %v3426_v54, %v3422_v10  ;;  %2419 = vpow2.f32 %v1115_v35  ;;  %v1131_v35 = vmul.f32 1.442695, %v1015_v3 }
 0x3fd   :  { %v3436_v31 = vpop.eup %2409  ;;  %2421 = vpow2.f32 %v1117_v44  ;;  %v3853_v44 = vld [vmem:[#allocation15_spill] sm:$0xff] }
 0x3fe   :  { %v3442_v21 = vpop.eup %2411  ;;  %v1203_v47 = vadd.f32 %v3436_v31, %v3432_v46  ;;  %2423 = vpow2.f32 %v1123_v4 }
 0x3ff   :  { %v3446_v5 = vpop.eup %2413 }
 0x400   :  { %1192 = vadd.xlane.f32.xlu1 %v1191_v6  ;;  %v1125_v6 = vmul.f32 1.442695, %v1012_v26  ;;  %v1020_v26 = vsub.f32 %v3853_v44, %v953_v52  ;;  %v3450_v39 = vpop.eup %2415  ;;  %v1209_v41 = vadd.f32 %v3446_v5, %v3442_v21 }
 0x401   :  { %v3454_v15 = vpop.eup %2417 }
 0x402   :  { %2425 = vpow2.f32 %v1125_v6  ;;  %v1141_v4 = vmul.f32 1.442695, %v1020_v26  ;;  %v1215_v6 = vadd.f32 %v3454_v15, %v3450_v39 }
 0x403   :  { %2427 = vpow2.f32 %v1131_v35 }
 0x404   :  { %1198 = vadd.xlane.f32.xlu1 %v1197_v42  ;;  %v1133_v42 = vmul.f32 1.442695, %v1016_v37 }
 0x406   :  { %2429 = vpow2.f32 %v1133_v42  ;;  %v3456_v3 = vpop.eup %2419 }
 0x407   :  { %v3460_v37 = vpop.eup %2421  ;;  %2431 = vpow2.f32 %v1139_v50 }
 0x408   :  { %1204 = vadd.xlane.f32.xlu1 %v1203_v47  ;;  %2433 = vpow2.f32 %v1141_v4  ;;  %v3462_v52 = vpop.eup %2423  ;;  %v1221_v47 = vadd.f32 %v3460_v37, %v3456_v3 }
 0x409   :  { %3854 = vst [vmem:[#allocation3_spill] sm:$0xff] %v3462_v52 }
 0x40c   :  { %1210 = vadd.xlane.f32.xlu1 %v1209_v41  ;;  %v3466_v35 = vpop.eup %2425 }
 0x40d   :  { %3855 = vst [vmem:[#allocation4_spill] sm:$0xff] %v3466_v35  ;;  %v3468_v11 = vpop.eup %2427  ;;  %v1227_v42 = vadd.f32 %v3466_v35, %v3462_v52 }
 0x40e   :  { %3856 = vst [vmem:[#allocation5_spill] sm:$0xff] %v3468_v11 }
 0x410   :  { %1216 = vadd.xlane.f32.xlu1 %v1215_v6  ;;  %v3472_v44 = vpop.eup %2429 }
 0x411   :  { %3857 = vst [vmem:[#allocation6_spill] sm:$0xff] %v3472_v44  ;;  %v3474_v26 = vpop.eup %2431  ;;  %v1233_v41 = vadd.f32 %v3472_v44, %v3468_v11 }
 0x412   :  { %3858 = vst [vmem:[#allocation7_spill] sm:$0xff] %v3474_v26  ;;  %v3478_v4 = vpop.eup %2433 }
 0x413   :  { %3859 = vst [vmem:[#allocation8_spill] sm:$0xff] %v3478_v4  ;;  %v1239_v6 = vadd.f32 %v3478_v4, %v3474_v26  ;;  %v3861_v4 = vld [vmem:[#allocation18_spill] sm:$0xff] }
 0x414   :  { %1222 = vadd.xlane.f32.xlu1 %v1221_v47 }
 0x415   :  { %v1157_v1 = vpop.xlane.xlu0 %1156 }
 0x416   :  { %2435 = vrcp.f32 %v1157_v1 }
 0x418   :  { %1228 = vadd.xlane.f32.xlu1 %v1227_v42 }
 0x419   :  { %v1160_v50 = vpop.xlane.xlu0 %1159 }
 0x41a   :  { %2437 = vrcp.f32 %v1160_v50 }
 0x41c   :  { %1234 = vadd.xlane.f32.xlu1 %v1233_v41 }
 0x41d   :  { %v1163_v52 = vpop.xlane.xlu1 %1162  ;;  %v216_v11 = vpop.permute.xlu0 %215 }
 0x420   :  { %1240 = vadd.xlane.f32.xlu1 %v1239_v6  ;;  %v2436_v47 = vpop.eup %2435 }
 0x421   :  { %v1284_v40 = vmul.f32 %v2436_v47, %v3186_v45  ;;  %v1166_v50 = vpop.xlane.xlu1 %1165 }
 0x422   :  { %2439 = vrcp.f32 %v1166_v50 }
 0x423   :  { %2441 = vrcp.f32 %v1163_v52 }
 0x424   :  { %v2438_v29 = vpop.eup %2437 }
 0x425   :  { %v1286_v1 = vmul.f32 %v2438_v29, %v3192_v14  ;;  %v1285_v6 = vmul.f32 %v2438_v29, %v3188_v8  ;;  %v1283_v14 = vmul.f32 %v2436_v47, %v3184_v53  ;;  %v3860_v8 = vld [vmem:[#allocation19_spill] sm:$0xff] }
 0x427   :  { %v1348_v42 = vpack.c.bf16 %v1286_v1, %v1284_v40  ;;  %v1347_v52 = vpack.c.bf16 %v1285_v6, %v1283_v14 }
 0x429   :  { %1411 = vmatprep.mubr.bf16.mxu0 %v1348_v42 }
 0x42c   :  { %v2440_v61 = vpop.eup %2439 }
 0x42d   :  { %v2442_v58 = vpop.eup %2441  ;;  %v1290_v45 = vmul.f32 %v2440_v61, %v3204_v51  ;;  %v1289_v29 = vmul.f32 %v2440_v61, %v3860_v8 }
 0x42e   :  { %v1288_v1 = vmul.f32 %v2442_v58, %v3198_v17  ;;  %v1287_v51 = vmul.f32 %v2442_v58, %v3861_v4 }
 0x430   :  { %v1350_v42 = vpack.c.bf16 %v1290_v45, %v1288_v1  ;;  %v1349_v47 = vpack.c.bf16 %v1289_v29, %v1287_v51 }
 0x44c   :  { %v1169_v44 = vpop.xlane.xlu1 %1168 }
 0x44d   :  { %2443 = vrcp.f32 %v1169_v44 }
 0x44e   :  { %v1172_v41 = vpop.xlane.xlu0 %1171 }
 0x44f   :  { %2445 = vrcp.f32 %v1172_v41 }
 0x450   :  { %v240_v26 = vpop.permute.xlu1 %239 }
 0x451   :  { %2101 = vmatprep.subr.bf16.mxu0 %v240_v26 }
 0x452   :  { %v1175_v40 = vpop.xlane.xlu0 %1174  ;;  %2102 = vmatpush3.bf16.msra.mxu0 %v216_v11 }
 0x453   :  { %2447 = vrcp.f32 %v1175_v40 }
 0x455   :  { %1412 = vmatmul.mubr.bf16.vlgmr.msra.gmra.mrb[16].mxu0 %v1347_v52 }
 0x456   :  { %v1178_v44 = vpop.xlane.xlu0 %1177  ;;  %1419 = vmatprep.mubr.bf16.mxu0 %v1350_v42 }
 0x457   :  { %v2444_v50 = vpop.eup %2443  ;;  %2449 = vrcp.f32 %v1178_v44 }
 0x458   :  { %v1292_v53 = vmul.f32 %v2444_v50, %v3229_v9  ;;  %v1291_v9 = vmul.f32 %v2444_v50, %v3227_v22 }
 0x459   :  { %v2446_v41 = vpop.eup %2445 }
 0x45a   :  { %v962_v35 = vpop.xlane.xlu0 %961  ;;  %v1294_v11 = vmul.f32 %v2446_v41, %v3224_v20  ;;  %v1293_v61 = vmul.f32 %v2446_v41, %v3221_v12 }
 0x45b   :  { %v1025_v17 = vsub.f32 %v3260_v25, %v962_v35  ;;  %v1026_v26 = vsub.f32 %v3263_v16, %v962_v35 }
 0x45c   :  { %v1352_v6 = vpack.c.bf16 %v1294_v11, %v1292_v53  ;;  %v1351_v4 = vpack.c.bf16 %v1293_v61, %v1291_v9 }
 0x45d   :  { %v1151_v45 = vmul.f32 1.442695, %v1025_v17  ;;  %v1153_v14 = vmul.f32 1.442695, %v1026_v26  ;;  %1420 = vmatmul.mubr.bf16.gmra.mrb[20].mxu0 %v1349_v47  ;;  %v2448_v40 = vpop.eup %2447 }
 0x45e   :  { %1427 = vmatprep.mubr.bf16.mxu0 %v1352_v6  ;;  %v1296_v20 = vmul.f32 %v2448_v40, %v3241_v63  ;;  %v1295_v52 = vmul.f32 %v2448_v40, %v3239_v30  ;;  %v1184_v63 = vpop.xlane.xlu0 %1183 }
 0x45f   :  { %2451 = vpow2.f32 %v1151_v45 }
 0x460   :  { %2453 = vpow2.f32 %v1153_v14 }
 0x461   :  { %v2450_v58 = vpop.eup %2449  ;;  %2455 = vrcp.f32 %v1184_v63 }
 0x462   :  { %v1298_v25 = vmul.f32 %v2450_v58, %v3251_v19  ;;  %v1297_v35 = vmul.f32 %v2450_v58, %v3245_v24  ;;  %v1190_v44 = vpop.xlane.xlu0 %1189 }
 0x463   :  { %2457 = vrcp.f32 %v1190_v44 }
 0x464   :  { %v1354_v16 = vpack.c.bf16 %v1298_v25, %v1296_v20  ;;  %v1353_v22 = vpack.c.bf16 %v1297_v35, %v1295_v52 }
 0x465   :  { %1428 = vmatmul.mubr.bf16.gmra.mrb[24].mxu0 %v1351_v4 }
 0x466   :  { %1435 = vmatprep.mubr.bf16.mxu0 %v1354_v16  ;;  %v1196_v51 = vpop.xlane.xlu0 %1195 }
 0x469   :  { %v3499_v1 = vpop.eup %2451 }
 0x46a   :  { %v3502_v42 = vpop.eup %2453  ;;  %v1202_v9 = vpop.xlane.xlu0 %1201 }
 0x46b   :  { %v1248_v12 = vadd.f32 %v3502_v42, %v3499_v1  ;;  %v2456_v11 = vpop.eup %2455 }
 0x46c   :  { %v1302_v14 = vmul.f32 %v2456_v11, %v3273_v43  ;;  %v1301_v61 = vmul.f32 %v2456_v11, %v3269_v32 }
 0x46d   :  { %1249 = vadd.xlane.f32.xlu0 %v1248_v12  ;;  %1436 = vmatmul.mubr.bf16.gmra.mrb[28].mxu0 %v1353_v22  ;;  %v2458_v17 = vpop.eup %2457 }
 0x46e   :  { %v1306_v16 = vmul.f32 %v2458_v17, %v3285_v2  ;;  %v1305_v12 = vmul.f32 %v2458_v17, %v3279_v56  ;;  %v1208_v22 = vpop.xlane.xlu0 %1207 }
 0x481   :  { %v959_v19 = vpop.xlane.xlu1 %958 }
 0x482   :  { %v1023_v50 = vsub.f32 %v3371_v34, %v959_v19  ;;  %v1024_v8 = vsub.f32 %v3374_v18, %v959_v19 }
 0x484   :  { %v1147_v24 = vmul.f32 1.442695, %v1023_v50  ;;  %v1149_v29 = vmul.f32 1.442695, %v1024_v8 }
 0x485   :  { %v1181_v30 = vpop.xlane.xlu1 %1180 }
 0x486   :  { %2459 = vpow2.f32 %v1147_v24  ;;  %v1214_v24 = vpop.xlane.xlu0 %1213 }
 0x487   :  { %2461 = vpow2.f32 %v1149_v29 }
 0x488   :  { %2463 = vrcp.f32 %v1181_v30 }
 0x489   :  { %v1187_v41 = vpop.xlane.xlu1 %1186 }
 0x48a   :  { %2465 = vrcp.f32 %v1187_v41  ;;  %v1220_v11 = vpop.xlane.xlu0 %1219 }
 0x48d   :  { %v1193_v53 = vpop.xlane.xlu1 %1192 }
 0x48e   :  { %2467 = vrcp.f32 %v1193_v53 }
 0x48f   :  { %2469 = vrcp.f32 %v1196_v51 }
 0x490   :  { %v3508_v26 = vpop.eup %2459 }
 0x491   :  { %v3510_v34 = vpop.eup %2461  ;;  %v1199_v6 = vpop.xlane.xlu1 %1198 }
 0x492   :  { %v2464_v18 = vpop.eup %2463  ;;  %v1245_v47 = vadd.f32 %v3510_v34, %v3508_v26  ;;  %2471 = vrcp.f32 %v1199_v6 }
 0x493   :  { %v1300_v45 = vmul.f32 %v2464_v18, %v3388_v33  ;;  %v1299_v40 = vmul.f32 %v2464_v18, %v3384_v36  ;;  %2473 = vrcp.f32 %v1202_v9 }
 0x494   :  { %v2466_v58 = vpop.eup %2465  ;;  %1246 = vadd.xlane.f32.xlu1 %v1245_v47 }
 0x495   :  { %v1356_v20 = vpack.c.bf16 %v1302_v14, %v1300_v45  ;;  %v1355_v25 = vpack.c.bf16 %v1301_v61, %v1299_v40  ;;  %v1304_v4 = vmul.f32 %v2466_v58, %v3396_v38  ;;  %v1303_v36 = vmul.f32 %v2466_v58, %v3392_v48  ;;  %v1205_v32 = vpop.xlane.xlu1 %1204  ;;  %v3862_v14 = vld [vmem:[#allocation20_spill] sm:$0xff]  ;;  %v1226_v40 = vpop.xlane.xlu0 %1225 }
 0x496   :  { %2475 = vrcp.f32 %v1205_v32 }
 0x497   :  { %1443 = vmatprep.mubr.bf16.mxu0 %v1356_v20  ;;  %v1358_v35 = vpack.c.bf16 %v1306_v16, %v1304_v4  ;;  %v1357_v2 = vpack.c.bf16 %v1305_v12, %v1303_v36  ;;  %2477 = vrcp.f32 %v1208_v22 }
 0x498   :  { %v2468_v52 = vpop.eup %2467  ;;  %1444 = vmatmul.mubr.bf16.gmra.mrb[32].mxu0 %v1355_v25 }
 0x499   :  { %1451 = vmatprep.mubr.bf16.mxu0 %v1358_v35  ;;  %v2470_v43 = vpop.eup %2469  ;;  %v1308_v33 = vmul.f32 %v2468_v52, %v3416_v57  ;;  %v1307_v50 = vmul.f32 %v2468_v52, %v3412_v27  ;;  %v1211_v8 = vpop.xlane.xlu1 %1210 }
 0x49a   :  { %v1310_v38 = vmul.f32 %v2470_v43, %v3295_v13  ;;  %v1309_v57 = vmul.f32 %v2470_v43, %v3291_v0  ;;  %2479 = vrcp.f32 %v1211_v8  ;;  %v1232_v4 = vpop.xlane.xlu0 %1231 }
 0x49b   :  { %2481 = vrcp.f32 %v1214_v24 }
 0x49c   :  { %v1360_v63 = vpack.c.bf16 %v1310_v38, %v1308_v33  ;;  %v2472_v19 = vpop.eup %2471  ;;  %v1359_v13 = vpack.c.bf16 %v1309_v57, %v1307_v50 }
 0x49d   :  { %v2474_v44 = vpop.eup %2473  ;;  %v1312_v48 = vmul.f32 %v2472_v19, %v3426_v54  ;;  %v1311_v51 = vmul.f32 %v2472_v19, %v3422_v10  ;;  %v1217_v53 = vpop.xlane.xlu1 %1216 }
 0x49e   :  { %v1314_v56 = vmul.f32 %v2474_v44, %v3306_v60  ;;  %v1313_v54 = vmul.f32 %v2474_v44, %v3301_v55  ;;  %2483 = vrcp.f32 %v1217_v53  ;;  %v1238_v33 = vpop.xlane.xlu0 %1237  ;;  %v3864_v44 = vld [vmem:[#allocation21_spill] sm:$0xff] }
 0x49f   :  { %2485 = vrcp.f32 %v1220_v11 }
 0x4a0   :  { %1452 = vmatmul.mubr.bf16.gmra.mrb[36].mxu0 %v1357_v2  ;;  %v1362_v29 = vpack.c.bf16 %v1314_v56, %v1312_v48  ;;  %v2476_v30 = vpop.eup %2475  ;;  %v1361_v60 = vpack.c.bf16 %v1313_v54, %v1311_v51  ;;  %v3866_v56 = vld [vmem:[#allocation3_spill] sm:$0xff]  ;;  %v3869_v51 = vld [vmem:[#allocation16_spill] sm:$0xff] }
 0x4a1   :  { %1459 = vmatprep.mubr.bf16.mxu0 %v1360_v63  ;;  %v2478_v41 = vpop.eup %2477  ;;  %v1316_v27 = vmul.f32 %v2476_v30, %v3436_v31  ;;  %v1315_v6 = vmul.f32 %v2476_v30, %v3432_v46  ;;  %v1223_v45 = vpop.xlane.xlu1 %1222  ;;  %v3868_v30 = vld [vmem:[#allocation22_spill] sm:$0xff] }
 0x4a2   :  { %v1318_v0 = vmul.f32 %v2478_v41, %v3316_v59  ;;  %v1317_v31 = vmul.f32 %v2478_v41, %v3862_v14  ;;  %2487 = vrcp.f32 %v1223_v45  ;;  %v1244_v50 = vpop.xlane.xlu0 %1243 }
 0x4a3   :  { %2489 = vrcp.f32 %v1226_v40 }
 0x4a4   :  { %v1364_v17 = vpack.c.bf16 %v1318_v0, %v1316_v27  ;;  %v2480_v18 = vpop.eup %2479  ;;  %v1363_v59 = vpack.c.bf16 %v1317_v31, %v1315_v6  ;;  %v3872_v6 = vld [vmem:[#allocation24_spill] sm:$0xff] }
 0x4a5   :  { %v2482_v47 = vpop.eup %2481  ;;  %v1320_v10 = vmul.f32 %v2480_v18, %v3446_v5  ;;  %v1319_v20 = vmul.f32 %v2480_v18, %v3442_v21  ;;  %v1229_v25 = vpop.xlane.xlu1 %1228  ;;  %v3871_v18 = vld [vmem:[#allocation8_spill] sm:$0xff] }
 0x4a6   :  { %v1322_v55 = vmul.f32 %v2482_v47, %v3324_v23  ;;  %v1321_v5 = vmul.f32 %v2482_v47, %v3318_v49  ;;  %2491 = vrcp.f32 %v1229_v25 }
 0x4a7   :  { %2493 = vrcp.f32 %v1232_v4 }
 0x4a8   :  { %1460 = vmatmul.mubr.bf16.gmra.mrb[40].mxu0 %v1359_v13  ;;  %v1366_v61 = vpack.c.bf16 %v1322_v55, %v1320_v10  ;;  %v2484_v58 = vpop.eup %2483  ;;  %v1365_v23 = vpack.c.bf16 %v1321_v5, %v1319_v20  ;;  %v3873_v10 = vld [vmem:[#allocation2_spill] sm:$0xff]  ;;  %v3874_v55 = vld [vmem:[#allocation7_spill] sm:$0xff] }
 0x4a9   :  { %1467 = vmatprep.mubr.bf16.mxu0 %v1362_v29  ;;  %v2486_v9 = vpop.eup %2485  ;;  %v1324_v46 = vmul.f32 %v2484_v58, %v3454_v15  ;;  %v1323_v36 = vmul.f32 %v2484_v58, %v3450_v39  ;;  %v1235_v32 = vpop.xlane.xlu1 %1234  ;;  %v3863_v39 = vld [vmem:[#allocation4_spill] sm:$0xff]  ;;  %v3867_v29 = vld [vmem:[#allocation6_spill] sm:$0xff] }
 0x4aa   :  { %v1326_v16 = vmul.f32 %v2486_v9, %v3342_v7  ;;  %v1325_v15 = vmul.f32 %v2486_v9, %v3334_v28  ;;  %2495 = vrcp.f32 %v1235_v32  ;;  %v3865_v28 = vld [vmem:[#allocation23_spill] sm:$0xff] }
 0x4ab   :  { %2497 = vrcp.f32 %v1238_v33 }
 0x4ac   :  { %v1368_v35 = vpack.c.bf16 %v1326_v16, %v1324_v46  ;;  %v2488_v52 = vpop.eup %2487  ;;  %v1367_v7 = vpack.c.bf16 %v1325_v15, %v1323_v36 }
 0x4ad   :  { %v2490_v43 = vpop.eup %2489  ;;  %v1328_v21 = vmul.f32 %v2488_v52, %v3460_v37  ;;  %v1327_v2 = vmul.f32 %v2488_v52, %v3456_v3  ;;  %v1241_v63 = vpop.xlane.xlu1 %1240 }
 0x4ae   :  { %v1330_v49 = vmul.f32 %v2490_v43, %v3348_v62  ;;  %v1329_v37 = vmul.f32 %v2490_v43, %v3864_v44  ;;  %2499 = vrcp.f32 %v1241_v63 }
 0x4af   :  { %2501 = vrcp.f32 %v1244_v50 }
 0x4b0   :  { %1468 = vmatmul.mubr.bf16.gmra.mrb[44].mxu0 %v1361_v60  ;;  %v1370_v12 = vpack.c.bf16 %v1330_v49, %v1328_v21  ;;  %v2492_v22 = vpop.eup %2491  ;;  %v1369_v62 = vpack.c.bf16 %v1329_v37, %v1327_v2  ;;  %v3870_v60 = vld [vmem:[#allocation5_spill] sm:$0xff] }
 0x4b1   :  { %1475 = vmatprep.mubr.bf16.mxu0 %v1364_v17  ;;  %v2494_v38 = vpop.eup %2493  ;;  %v1332_v19 = vmul.f32 %v2492_v22, %v3863_v39  ;;  %v1331_v13 = vmul.f32 %v2492_v22, %v3866_v56 }
 0x4b2   :  { %v1334_v8 = vmul.f32 %v2494_v38, %v3865_v28  ;;  %v1333_v41 = vmul.f32 %v2494_v38, %v3868_v30 }
 0x4b4   :  { %v1372_v48 = vpack.c.bf16 %v1334_v8, %v1332_v19  ;;  %v2496_v57 = vpop.eup %2495  ;;  %v1371_v27 = vpack.c.bf16 %v1333_v41, %v1331_v13 }
 0x4b5   :  { %v2498_v24 = vpop.eup %2497  ;;  %v1336_v3 = vmul.f32 %v2496_v57, %v3867_v29  ;;  %v1335_v17 = vmul.f32 %v2496_v57, %v3870_v60 }
 0x4b6   :  { %v1338_v53 = vmul.f32 %v2498_v24, %v3869_v51  ;;  %v1337_v45 = vmul.f32 %v2498_v24, %v3872_v6 }
 0x4b8   :  { %1476 = vmatmul.mubr.bf16.gmra.mrb[48].mxu0 %v1363_v59  ;;  %v1374_v54 = vpack.c.bf16 %v1338_v53, %v1336_v3  ;;  %v2500_v11 = vpop.eup %2499  ;;  %v1373_v31 = vpack.c.bf16 %v1337_v45, %v1335_v17 }
 0x4b9   :  { %1483 = vmatprep.mubr.bf16.mxu0 %v1366_v61  ;;  %v2502_v0 = vpop.eup %2501  ;;  %v1340_v47 = vmul.f32 %v2500_v11, %v3871_v18  ;;  %v1339_v59 = vmul.f32 %v2500_v11, %v3874_v55  ;;  %v3875_v61 = vld [vmem:[#allocation17_spill] sm:$0xff] }
 0x4ba   :  { %v1342_v14 = vmul.f32 %v2502_v0, %v3873_v10  ;;  %v1341_v58 = vmul.f32 %v2502_v0, %v3875_v61  ;;  %v2311_v0 = vld [vmem:[%s3766_s2] sm:$0xff]  }
 0x4bb   :  { %2207 = vmatprep.subr.bf16.mxu0 %v2311_v0 }
 0x4bc   :  { %v1376_v40 = vpack.c.bf16 %v1342_v14, %v1340_v47  ;;  %v1375_v9 = vpack.c.bf16 %v1341_v58, %v1339_v59  ;;  %2208 = vmatpush3.bf16.msra.mxu0 %v2311_v0 }
 0x4c0   :  { %1484 = vmatmul.mubr.bf16.gmra.mrb[52].mxu0 %v1365_v23 }
 0x4c1   :  { %1491 = vmatprep.mubr.bf16.mxu0 %v1368_v35 }
 0x4c8   :  { %1492 = vmatmul.mubr.bf16.gmra.mrb[56].mxu0 %v1367_v7 }
 0x4c9   :  { %1499 = vmatprep.mubr.bf16.mxu0 %v1370_v12 }
 0x4d0   :  { %1500 = vmatmul.mubr.bf16.gmra.mrb[60].mxu0 %v1369_v62 }
 0x4d1   :  { %1507 = vmatprep.mubr.bf16.mxu0 %v1372_v48 }
 0x4d8   :  { %1508 = vmatmul.mubr.bf16.gmra.mrb[64].mxu0 %v1371_v27 }
 0x4d9   :  { %1515 = vmatprep.mubr.bf16.mxu0 %v1374_v54 }
 0x4e0   :  { %1516 = vmatmul.mubr.bf16.gmra.mrb[68].mxu0 %v1373_v31 }
 0x4e1   :  { %1523 = vmatprep.mubr.bf16.mxu0 %v1376_v40 }
 0x4e8   :  { %1524 = vmatmul.mubr.bf16.gmra.mrb[72].mxu0 %v1375_v9 }
 0x4fa   :  { %v1250_v20 = vpop.xlane.xlu0 %1249 }
 0x4fb   :  { %2503 = vrcp.f32 %v1250_v20 }
 0x505   :  { %v2504_v4 = vpop.eup %2503 }
 0x506   :  { %v1346_v32 = vmul.f32 %v2504_v4, %v3502_v42  ;;  %v1345_v15 = vmul.f32 %v2504_v4, %v3499_v1 }
 0x521   :  { %v1247_v25 = vpop.xlane.xlu1 %1246 }
 0x522   :  { %2505 = vrcp.f32 %v1247_v25 }
 0x528   :  { %v2103_v46 = vpop.f32.mrb[16].mxu0 }
 0x529   :  { %v2104_v5 = vpop.f32.mrb[17].mxu0 }
 0x52a   :  { %v3558_v16 = vadd.f32 %v2104_v5, %v2103_v46  ;;  %v2106_v23 = vpop.f32.mrb[18].mxu0 }
 0x52b   :  { %v2107_v35 = vpop.f32.mrb[19].mxu0 }
 0x52c   :  { %v2506_v52 = vpop.eup %2505  ;;  %v3560_v43 = vadd.f32 %v2107_v35, %v2106_v23  ;;  %v2312_v23 = vld [vmem:[%s3766_s2 + $0x8] sm:$0xff]  }
 0x52d   :  { %v1344_v36 = vmul.f32 %v2506_v52, %v3510_v34  ;;  %v1343_v21 = vmul.f32 %v2506_v52, %v3508_v26  ;;  %2209 = vmatprep.subr.bf16.mxu0 %v2312_v23 }
 0x52e   :  { %2210 = vmatpush3.bf16.msra.mxu0 %v2312_v23 }
 0x52f   :  { %v1378_v33 = vpack.c.bf16 %v1346_v32, %v1344_v36  ;;  %v1377_v49 = vpack.c.bf16 %v1345_v15, %v1343_v21 }
 0x530   :  { %v2109_v7 = vpop.f32.mrb[20].mxu0 }
 0x531   :  { %1531 = vmatprep.mubr.bf16.mxu0 %v1378_v33  ;;  %v2110_v12 = vpop.f32.mrb[21].mxu0 }
 0x532   :  { %v3566_v22 = vadd.f32 %v2110_v12, %v2109_v7  ;;  %1532 = vmatmul.mubr.bf16.gmra.mrb[76].mxu0 %v1377_v49  ;;  %v2112_v38 = vpop.f32.mrb[22].mxu0 }
 0x533   :  { %v2113_v2 = vpop.f32.mrb[23].mxu0 }
 0x534   :  { %v3568_v63 = vadd.f32 %v2113_v2, %v2112_v38 }
 0x538   :  { %v2115_v39 = vpop.f32.mrb[24].mxu0 }
 0x539   :  { %v2116_v34 = vpop.f32.mrb[25].mxu0 }
 0x53a   :  { %v3570_v19 = vadd.f32 %v2116_v34, %v2115_v39  ;;  %v2118_v42 = vpop.f32.mrb[26].mxu0 }
 0x53b   :  { %v2119_v26 = vpop.f32.mrb[27].mxu0 }
 0x53c   :  { %v3572_v44 = vadd.f32 %v2119_v26, %v2118_v42 }
 0x540   :  { %v2121_v1 = vpop.f32.mrb[28].mxu0 }
 0x541   :  { %v2122_v37 = vpop.f32.mrb[29].mxu0 }
 0x542   :  { %v3574_v50 = vadd.f32 %v2122_v37, %v2121_v1  ;;  %v2124_v28 = vpop.f32.mrb[30].mxu0 }
 0x543   :  { %v2125_v8 = vpop.f32.mrb[31].mxu0 }
 0x544   :  { %v3576_v62 = vadd.f32 %v2125_v8, %v2124_v28 }
 0x56b   :  { %v2127_v48 = vpop.f32.mrb[32].mxu0 }
 0x56c   :  { %v2128_v57 = vpop.f32.mrb[33].mxu0 }
 0x56d   :  { %v2129_v24 = vadd.f32 %v2128_v57, %v2127_v48  ;;  %v2130_v56 = vpop.f32.mrb[34].mxu0 }
 0x56e   :  { %v2131_v13 = vpop.f32.mrb[35].mxu0 }
 0x56f   :  { %v2132_v29 = vadd.f32 %v2131_v13, %v2130_v56 }
 0x571   :  { %v2239_v3 = vpack.i.bf16 %v2132_v29, %v2129_v24  ;;  %v2313_v24 = vld [vmem:[%s3766_s2 + $0x10] sm:$0xff]  }
 0x572   :  { %2211 = vmatprep.subr.bf16.mxu0 %v2313_v24 }
 0x573   :  { %2240 = vrot.lane.b32.xlu1 %v2239_v3, %s2536_s20  ;;  %v2133_v30 = vpop.f32.mrb[36].mxu0  ;;  %2212 = vmatpush3.bf16.msra.mxu0 %v2313_v24 }
 0x574   :  { %v2134_v41 = vpop.f32.mrb[37].mxu0 }
 0x575   :  { %v2135_v51 = vadd.f32 %v2134_v41, %v2133_v30  ;;  %v2136_v53 = vpop.f32.mrb[38].mxu0  ;;  %v2314_v30 = vld [vmem:[%s3766_s2 + $0x18] sm:$0xff]  }
 0x576   :  { %v2137_v27 = vpop.f32.mrb[39].mxu0  ;;  %2213 = vmatprep.subr.bf16.mxu0 %v2314_v30 }
 0x577   :  { %v2138_v54 = vadd.f32 %v2137_v27, %v2136_v53  ;;  %2214 = vmatpush3.bf16.msra.mxu0 %v2314_v30 }
 0x579   :  { %v2244_v11 = vpack.i.bf16 %v2138_v54, %v2135_v51 }
 0x57b   :  { %2245 = vrot.lane.b32.xlu0 %v2244_v11, %s2536_s20  ;;  %v2139_v60 = vpop.f32.mrb[40].mxu0 }
 0x57c   :  { %v2140_v17 = vpop.f32.mrb[41].mxu0 }
 0x57d   :  { %v2141_v18 = vadd.f32 %v2140_v17, %v2139_v60  ;;  %v2142_v47 = vpop.f32.mrb[42].mxu0 }
 0x57e   :  { %v2143_v6 = vpop.f32.mrb[43].mxu0 }
 0x57f   :  { %v2144_v45 = vadd.f32 %v2143_v6, %v2142_v47 }
 0x581   :  { %v2249_v10 = vpack.i.bf16 %v2144_v45, %v2141_v18 }
 0x583   :  { %2250 = vrot.lane.b32.xlu0 %v2249_v10, %s2536_s20  ;;  %v2145_v14 = vpop.f32.mrb[44].mxu0 }
 0x584   :  { %v2146_v31 = vpop.f32.mrb[45].mxu0 }
 0x585   :  { %v2147_v40 = vadd.f32 %v2146_v31, %v2145_v14  ;;  %v2148_v55 = vpop.f32.mrb[46].mxu0 }
 0x586   :  { %v2149_v59 = vpop.f32.mrb[47].mxu0 }
 0x587   :  { %v2150_v61 = vadd.f32 %v2149_v59, %v2148_v55 }
 0x589   :  { %v2254_v58 = vpack.i.bf16 %v2150_v61, %v2147_v40 }
 0x58b   :  { %2255 = vrot.lane.b32.xlu1 %v2254_v58, %s2536_s20  ;;  %v2151_v9 = vpop.f32.mrb[48].mxu0 }
 0x58c   :  { %v2152_v20 = vpop.f32.mrb[49].mxu0 }
 0x58d   :  { %v2153_v25 = vadd.f32 %v2152_v20, %v2151_v9  ;;  %v2154_v46 = vpop.f32.mrb[50].mxu0 }
 0x58e   :  { %v2155_v5 = vpop.f32.mrb[51].mxu0 }
 0x58f   :  { %v2156_v4 = vadd.f32 %v2155_v5, %v2154_v46 }
 0x591   :  { %v2259_v35 = vpack.i.bf16 %v2156_v4, %v2153_v25 }
 0x593   :  { %2260 = vrot.lane.b32.xlu1 %v2259_v35, %s2537_s25  ;;  %v2157_v52 = vpop.f32.mrb[52].mxu0 }
 0x594   :  { %v2158_v36 = vpop.f32.mrb[53].mxu0 }
 0x595   :  { %v2159_v32 = vadd.f32 %v2158_v36, %v2157_v52  ;;  %v2160_v21 = vpop.f32.mrb[54].mxu0 }
 0x596   :  { %v2161_v15 = vpop.f32.mrb[55].mxu0 }
 0x597   :  { %v2162_v33 = vadd.f32 %v2161_v15, %v2160_v21 }
 0x599   :  { %v2264_v49 = vpack.i.bf16 %v2162_v33, %v2159_v32 }
 0x59b   :  { %2265 = vrot.lane.b32.xlu1 %v2264_v49, %s2537_s25  ;;  %v2163_v7 = vpop.f32.mrb[56].mxu0 }
 0x59c   :  { %v2164_v12 = vpop.f32.mrb[57].mxu0 }
 0x59d   :  { %v2165_v38 = vadd.f32 %v2164_v12, %v2163_v7  ;;  %v2166_v2 = vpop.f32.mrb[58].mxu0 }
 0x59e   :  { %v2167_v39 = vpop.f32.mrb[59].mxu0 }
 0x59f   :  { %v2168_v34 = vadd.f32 %v2167_v39, %v2166_v2 }
 0x5a1   :  { %v2274_v42 = vpack.i.bf16 %v2168_v34, %v2165_v38 }
 0x5a3   :  { %v2169_v26 = vpop.f32.mrb[60].mxu0 }
 0x5a4   :  { %v2170_v1 = vpop.f32.mrb[61].mxu0 }
 0x5a5   :  { %v2171_v37 = vadd.f32 %v2170_v1, %v2169_v26  ;;  %v2172_v28 = vpop.f32.mrb[62].mxu0 }
 0x5a6   :  { %v2173_v8 = vpop.f32.mrb[63].mxu0 }
 0x5a7   :  { %v2174_v48 = vadd.f32 %v2173_v8, %v2172_v28 }
 0x5a9   :  { %v2284_v57 = vpack.i.bf16 %v2174_v48, %v2171_v37 }
 0x5ab   :  { %v2175_v56 = vpop.f32.mrb[64].mxu0 }
 0x5ac   :  { %v2176_v13 = vpop.f32.mrb[65].mxu0 }
 0x5ad   :  { %v2177_v29 = vadd.f32 %v2176_v13, %v2175_v56  ;;  %v2178_v3 = vpop.f32.mrb[66].mxu0 }
 0x5ae   :  { %v2179_v41 = vpop.f32.mrb[67].mxu0 }
 0x5af   :  { %v2180_v51 = vadd.f32 %v2179_v41, %v2178_v3 }
 0x5b1   :  { %v2269_v53 = vpack.i.bf16 %v2180_v51, %v2177_v29 }
 0x5b3   :  { %2270 = vrot.lane.b32.xlu0 %v2269_v53, %s2538_s30  ;;  %v2181_v27 = vpop.f32.mrb[68].mxu0 }
 0x5b4   :  { %v2182_v54 = vpop.f32.mrb[69].mxu0 }
 0x5b5   :  { %v2183_v11 = vadd.f32 %v2182_v54, %v2181_v27  ;;  %v2184_v0 = vpop.f32.mrb[70].mxu0 }
 0x5b6   :  { %v2185_v60 = vpop.f32.mrb[71].mxu0 }
 0x5b7   :  { %v2186_v17 = vadd.f32 %v2185_v60, %v2184_v0  ;;  %2275 = vrot.lane.b32.xlu0 %v2274_v42, %s2537_s25 }
 0x5b9   :  { %v2279_v18 = vpack.i.bf16 %v2186_v17, %v2183_v11 }
 0x5bb   :  { %2280 = vrot.lane.b32.xlu1 %v2279_v18, %s2538_s30  ;;  %v2187_v47 = vpop.f32.mrb[72].mxu0 }
 0x5bc   :  { %v2188_v6 = vpop.f32.mrb[73].mxu0 }
 0x5bd   :  { %v2189_v45 = vadd.f32 %v2188_v6, %v2187_v47  ;;  %v2190_v10 = vpop.f32.mrb[74].mxu0 }
 0x5be   :  { %v2191_v14 = vpop.f32.mrb[75].mxu0 }
 0x5bf   :  { %v2192_v31 = vadd.f32 %v2191_v14, %v2190_v10  ;;  %2285 = vrot.lane.b32.xlu1 %v2284_v57, %s2537_s25 }
 0x5c1   :  { %v2289_v40 = vpack.i.bf16 %v2192_v31, %v2189_v45 }
 0x5c3   :  { %2290 = vrot.lane.b32.xlu0 %v2289_v40, %s2538_s30 }
 0x5e5   :  { %v2241_v55 = vpop.permute.xlu1 %2240 }
 0x5e6   :  { %v2243_v15 = vunpack.i.h.bf16 %v2241_v55  ;;  %v2242_v33 = vunpack.i.l.bf16 %v2241_v55 }
 0x5e8   :  { %v1637_v7 = vsel %vm277_vm1, %v3560_v43, %v2243_v15  ;;  %v1636_v12 = vsel %vm277_vm1, %v3558_v16, %v2242_v33  ;;  %v2524_v33 = vld [vmem:[%s3765_s0 + $0x30] sm:$0xff] }
 0x5ed   :  { %v2246_v36 = vpop.permute.xlu0 %2245 }
 0x5ee   :  { %v2248_v28 = vunpack.i.h.bf16 %v2246_v36  ;;  %v2247_v8 = vunpack.i.l.bf16 %v2246_v36 }
 0x5f0   :  { %v1639_v16 = vsel %vm277_vm1, %v3568_v63, %v2248_v28  ;;  %v1638_v24 = vsel %vm277_vm1, %v3566_v22, %v2247_v8  ;;  %v2529_v28 = vld [vmem:[%s3765_s0 + $0x10] sm:$0xff] }
 0x5f5   :  { %v2251_v21 = vpop.permute.xlu0 %2250 }
 0x5f6   :  { %v2253_v27 = vunpack.i.h.bf16 %v2251_v21  ;;  %v2252_v54 = vunpack.i.l.bf16 %v2251_v21 }
 0x5f8   :  { %v1641_v22 = vsel %vm277_vm1, %v3572_v44, %v2253_v27  ;;  %v1640_v60 = vsel %vm277_vm1, %v3570_v19, %v2252_v54 }
 0x5fd   :  { %v2256_v59 = vpop.permute.xlu1 %2255 }
 0x5fe   :  { %v2258_v61 = vunpack.i.h.bf16 %v2256_v59  ;;  %v2257_v58 = vunpack.i.l.bf16 %v2256_v59 }
 0x600   :  { %v3599_v9 = vsel %vm277_vm1, %v3576_v62, %v2258_v61  ;;  %v3603_v20 = vsel %vm277_vm1, %v3574_v50, %v2257_v58 }
 0x605   :  { %v2193_v25 = vpop.f32.mrb[76].mxu0  ;;  %v2261_v32 = vpop.permute.xlu1 %2260 }
 0x606   :  { %v2194_v46 = vpop.f32.mrb[77].mxu0  ;;  %v2263_v62 = vunpack.i.h.bf16 %v2261_v32  ;;  %v2262_v49 = vunpack.i.l.bf16 %v2261_v32 }
 0x607   :  { %v2195_v5 = vadd.f32 %v2194_v46, %v2193_v25  ;;  %v2196_v4 = vpop.f32.mrb[78].mxu0 }
 0x608   :  { %v2197_v23 = vpop.f32.mrb[79].mxu0  ;;  %v1645_v39 = vsel %vm1644_vm10, %v1636_v12, %v2262_v49  ;;  %v1646_v34 = vsel %vm1644_vm10, %v1637_v7, %v2263_v62  ;;  %v2526_v12 = vld [vmem:[%s3765_s0 + $0x38] sm:$0xff] }
 0x609   :  { %v2198_v35 = vadd.f32 %v2197_v23, %v2196_v4 }
 0x60b   :  { %v2294_v52 = vpack.i.bf16 %v2198_v35, %v2195_v5 }
 0x60d   :  { %2295 = vrot.lane.b32.xlu1 %v2294_v52, %s2538_s30  ;;  %v2266_v42 = vpop.permute.xlu1 %2265 }
 0x60e   :  { %v2268_v48 = vunpack.i.h.bf16 %v2266_v42  ;;  %v2267_v57 = vunpack.i.l.bf16 %v2266_v42 }
 0x610   :  { %v1648_v29 = vsel %vm1644_vm10, %v1639_v16, %v2268_v48  ;;  %v1647_v3 = vsel %vm1644_vm10, %v1638_v24, %v2267_v57  ;;  %v2530_v57 = vld [vmem:[%s3765_s0 + $0x18] sm:$0xff] }
 0x625   :  { %v2271_v50 = vpop.permute.xlu0 %2270 }
 0x626   :  { %v2273_v38 = vunpack.i.h.bf16 %v2271_v50  ;;  %v2272_v2 = vunpack.i.l.bf16 %v2271_v50  ;;  %v2525_v50 = vld [vmem:[%s3765_s0 + $0x28] sm:$0xff] }
 0x628   :  { %v1654_v26 = vsel %vm1653_vm11, %v1645_v39, %v2272_v2  ;;  %v1655_v1 = vsel %vm1653_vm11, %v1646_v34, %v2273_v38  ;;  %v2527_v39 = vld [vmem:[%s3765_s0] sm:$0xff] }
 0x629   :  { %v1662_v37 = vpack.c.bf16 %v1655_v1, %v1654_v26  ;;  %v2276_v30 = vpop.permute.xlu0 %2275  ;;  %v2528_v26 = vld [vmem:[%s3765_s0 + $0x8] sm:$0xff] }
 0x62a   :  { %v2278_v11 = vunpack.i.h.bf16 %v2276_v30  ;;  %v2277_v0 = vunpack.i.l.bf16 %v2276_v30 }
 0x62b   :  { %2215 = vmatprep.mubr.msk.bf16.mxu0 %vm83_vm0, %v1662_v37 }
 0x62c   :  { %v1650_v47 = vsel %vm1644_vm10, %v1641_v22, %v2278_v11  ;;  %v1649_v6 = vsel %vm1644_vm10, %v1640_v60, %v2277_v0 }
 0x62d   :  { %v2281_v43 = vpop.permute.xlu1 %2280 }
 0x62e   :  { %v2283_v56 = vunpack.i.h.bf16 %v2281_v43  ;;  %v2282_v13 = vunpack.i.l.bf16 %v2281_v43 }
 0x630   :  { %v1656_v41 = vsel %vm1653_vm11, %v1647_v3, %v2282_v13  ;;  %v1657_v51 = vsel %vm1653_vm11, %v1648_v29, %v2283_v56 }
 0x631   :  { %v1663_v53 = vpack.c.bf16 %v1657_v51, %v1656_v41  ;;  %v2286_v31 = vpop.permute.xlu1 %2285 }
 0x632   :  { %v2288_v40 = vunpack.i.h.bf16 %v2286_v31  ;;  %v2287_v55 = vunpack.i.l.bf16 %v2286_v31 }
 0x633   :  { %2216 = vmatmul.mubr.msk.bf16.vlgmr.msra.gmra.mrb[80].mxu0 %vm83_vm0, %v1663_v53 }
 0x634   :  { %v1651_v19 = vsel %vm1644_vm10, %v3603_v20, %v2287_v55  ;;  %v1652_v58 = vsel %vm1644_vm10, %v3599_v9, %v2288_v40  ;;  %v2523_v20 = vld [vmem:[%s3765_s0 + $0x20] sm:$0xff] }
 0x635   :  { %v2291_v63 = vpop.permute.xlu0 %2290 }
 0x636   :  { %v2293_v17 = vunpack.i.h.bf16 %v2291_v63  ;;  %v2292_v18 = vunpack.i.l.bf16 %v2291_v63 }
 0x638   :  { %v1659_v45 = vsel %vm1653_vm11, %v1650_v47, %v2293_v17  ;;  %v1658_v10 = vsel %vm1653_vm11, %v1649_v6, %v2292_v18 }
 0x639   :  { %v1664_v14 = vpack.c.bf16 %v1659_v45, %v1658_v10 }
 0x63b   :  { %2219 = vmatprep.mubr.msk.bf16.mxu0 %vm83_vm0, %v1664_v14 }
 0x67f   :  { %v2296_v44 = vpop.permute.xlu1 %2295 }
 0x680   :  { %v2298_v59 = vunpack.i.h.bf16 %v2296_v44  ;;  %v2297_v61 = vunpack.i.l.bf16 %v2296_v44 }
 0x682   :  { %v1660_v25 = vsel %vm1653_vm11, %v1651_v19, %v2297_v61  ;;  %v1661_v46 = vsel %vm1653_vm11, %v1652_v58, %v2298_v59 }
 0x683   :  { %v1665_v5 = vpack.c.bf16 %v1661_v46, %v1660_v25 }
 0x685   :  { %2220 = vmatmul.mubr.msk.bf16.gmra.mrb[84].mxu0 %vm83_vm0, %v1665_v5 }
 0x706   :  { %v2217_v4 = vpop.f32.mrb[80].mxu0 }
 0x707   :  { %v1736_v23 = vpop.f32.mrb[81].mxu0  ;;  %v3684_v8 = vadd.f32 %v2529_v28, %v2217_v4 }
 0x708   :  { %v2218_v35 = vpop.f32.mrb[82].mxu0  ;;  %v3668_v34 = vadd.f32 %v2527_v39, %v1736_v23 }
 0x709   :  { %v1739_v52 = vpop.f32.mrb[83].mxu0  ;;  %v3692_v43 = vadd.f32 %v2530_v57, %v2218_v35  ;;  %v1777_v24 = vmul.f32 %v3684_v8, %v3684_v8 }
 0x70a   :  { %v3676_v1 = vadd.f32 %v2528_v26, %v1739_v52  ;;  %v1775_v48 = vmul.f32 %v3668_v34, %v3668_v34 }
 0x70b   :  { %v1778_v56 = vmul.f32 %v3692_v43, %v3692_v43  ;;  %v1789_v18 = vsel %vm1644_vm10, %v1777_v24, 0.0 }
 0x70c   :  { %v1776_v16 = vmul.f32 %v3676_v1, %v3676_v1  ;;  %v1783_v22 = vsel %vm1644_vm10, %v1775_v48, 0.0 }
 0x70d   :  { %v1792_v6 = vsel %vm1644_vm10, %v1778_v56, 0.0 }
 0x70e   :  { %v1786_v60 = vsel %vm1644_vm10, %v1776_v16, 0.0 }
 0x758   :  { %v2221_v36 = vpop.f32.mrb[84].mxu0 }
 0x759   :  { %v1752_v32 = vpop.f32.mrb[85].mxu0  ;;  %v3648_v62 = vadd.f32 %v2524_v33, %v2221_v36 }
 0x75a   :  { %v3643_v21 = vadd.f32 %v2523_v20, %v1752_v32  ;;  %v2222_v9 = vpop.f32.mrb[86].mxu0 }
 0x75b   :  { %v1755_v15 = vpop.f32.mrb[87].mxu0  ;;  %v3660_v38 = vadd.f32 %v2526_v12, %v2222_v9  ;;  %v1781_v42 = vmul.f32 %v3648_v62, %v3648_v62 }
 0x75c   :  { %v1779_v49 = vmul.f32 %v3643_v21, %v3643_v21  ;;  %v3655_v7 = vadd.f32 %v2525_v50, %v1755_v15 }
 0x75d   :  { %v1782_v37 = vmul.f32 %v3660_v38, %v3660_v38  ;;  %v1801_v29 = vsel %vm1644_vm10, %v1781_v42, 0.0 }
 0x75e   :  { %v1780_v2 = vmul.f32 %v3655_v7, %v3655_v7  ;;  %1851 = vrot.lane.b32.xlu0 %v1779_v49, %s2532_s16  ;;  %v1795_v13 = vsel %vm1644_vm10, %v1779_v49, 0.0 }
 0x75f   :  { %v1804_v30 = vsel %vm1644_vm10, %v1782_v37, 0.0 }
 0x760   :  { %1853 = vrot.lane.b32.xlu1 %v1780_v2, %s2532_s16  ;;  %v1798_v3 = vsel %vm1644_vm10, %v1780_v2, 0.0 }
 0x762   :  { %1855 = vrot.lane.b32.xlu0 %v1781_v42, %s2532_s16 }
 0x764   :  { %1857 = vrot.lane.b32.xlu1 %v1782_v37, %s2532_s16 }
 0x766   :  { %1843 = vrot.lane.b32.xlu0 %v1775_v48, %s2532_s16 }
 0x768   :  { %1845 = vrot.lane.b32.xlu1 %v1776_v16, %s2532_s16 }
 0x76a   :  { %1847 = vrot.lane.b32.xlu0 %v1777_v24, %s2532_s16 }
 0x76c   :  { %1849 = vrot.lane.b32.xlu1 %v1778_v56, %s2532_s16 }
 0x789   :  { %1796 = vadd.xlane.f32.xlu0 %v1795_v13 }
 0x78d   :  { %1802 = vadd.xlane.f32.xlu0 %v1801_v29 }
 0x790   :  { %1799 = vadd.xlane.f32.xlu1 %v1798_v3 }
 0x791   :  { %1805 = vadd.xlane.f32.xlu0 %v1804_v30 }
 0x7d0   :  { %v1852_v41 = vpop.permute.xlu0 %1851 }
 0x7d1   :  { %v1879_v51 = vsel %vm1644_vm10, %v1852_v41, 0.0 }
 0x7d2   :  { %v1854_v53 = vpop.permute.xlu1 %1853  ;;  %1880 = vadd.xlane.f32.xlu1 %v1879_v51 }
 0x7d3   :  { %v1882_v27 = vsel %vm1644_vm10, %v1854_v53, 0.0 }
 0x7d4   :  { %v1856_v54 = vpop.permute.xlu0 %1855  ;;  %1883 = vadd.xlane.f32.xlu0 %v1882_v27 }
 0x7d5   :  { %v1885_v11 = vsel %vm1644_vm10, %v1856_v54, 0.0 }
 0x7d6   :  { %v1858_v0 = vpop.permute.xlu1 %1857  ;;  %1886 = vadd.xlane.f32.xlu1 %v1885_v11 }
 0x7d7   :  { %v1888_v63 = vsel %vm1644_vm10, %v1858_v0, 0.0 }
 0x7d8   :  { %1889 = vadd.xlane.f32.xlu0 %v1888_v63  ;;  %v1844_v17 = vpop.permute.xlu0 %1843 }
 0x7d9   :  { %v1867_v45 = vsel %vm1644_vm10, %v1844_v17, 0.0 }
 0x7da   :  { %1784 = vadd.xlane.f32.xlu1 %v1783_v22  ;;  %v1846_v47 = vpop.permute.xlu1 %1845 }
 0x7db   :  { %v1870_v14 = vsel %vm1644_vm10, %v1846_v47, 0.0 }
 0x7dc   :  { %1787 = vadd.xlane.f32.xlu0 %v1786_v60  ;;  %v1848_v10 = vpop.permute.xlu0 %1847 }
 0x7dd   :  { %v1873_v40 = vsel %vm1644_vm10, %v1848_v10, 0.0 }
 0x7de   :  { %1790 = vadd.xlane.f32.xlu1 %v1789_v18  ;;  %v1850_v31 = vpop.permute.xlu1 %1849 }
 0x7df   :  { %v1876_v55 = vsel %vm1644_vm10, %v1850_v31, 0.0 }
 0x7e0   :  { %1793 = vadd.xlane.f32.xlu0 %v1792_v6 }
 0x7e2   :  { %1868 = vadd.xlane.f32.xlu1 %v1867_v45 }
 0x7e4   :  { %1871 = vadd.xlane.f32.xlu0 %v1870_v14 }
 0x7e6   :  { %1874 = vadd.xlane.f32.xlu1 %v1873_v40 }
 0x7e8   :  { %1877 = vadd.xlane.f32.xlu0 %v1876_v55 }
 0x816   :  { %v1797_v44 = vpop.xlane.xlu0 %1796 }
 0x81a   :  { %v1803_v59 = vpop.xlane.xlu0 %1802 }
 0x81d   :  { %v1800_v61 = vpop.xlane.xlu1 %1799 }
 0x81e   :  { %v1821_v19 = vadd.f32 %v1800_v61, %v1797_v44  ;;  %v1806_v58 = vpop.xlane.xlu0 %1805 }
 0x81f   :  { %v1828_v25 = vadd.f32 %v1806_v58, %v1803_v59 }
 0x820   :  { %v1822_v46 = vrot.slane %v1821_v19, 4 }
 0x821   :  { %v1829_v5 = vrot.slane %v1828_v25, 4 }
 0x822   :  { %v1823_v4 = vadd.f32 %v1822_v46, %v1821_v19 }
 0x823   :  { %v1830_v23 = vadd.f32 %v1829_v5, %v1828_v25 }
 0x824   :  { %v1824_v35 = vrot.slane %v1823_v4, 2 }
 0x825   :  { %v1831_v52 = vrot.slane %v1830_v23, 2 }
 0x826   :  { %v1825_v36 = vadd.f32 %v1824_v35, %v1823_v4 }
 0x827   :  { %v1832_v32 = vadd.f32 %v1831_v52, %v1830_v23 }
 0x828   :  { %v1826_v9 = vrot.slane %v1825_v36, 1 }
 0x829   :  { %v1833_v49 = vrot.slane %v1832_v32, 1 }
 0x82a   :  { %v1827_v50 = vadd.f32 %v1826_v9, %v1825_v36 }
 0x82b   :  { %v1834_v37 = vadd.f32 %v1833_v49, %v1832_v32 }
 0x82c   :  { %v1921_v28 = vadd.f32 1e-05, %v1827_v50 }
 0x82d   :  { %v1922_v56 = vadd.f32 1e-05, %v1834_v37 }
 0x82e   :  { %v1925_v13 = vmul.f32 0.001953125, %v1921_v28 }
 0x82f   :  { %v1926_v51 = vmul.f32 0.001953125, %v1922_v56 }
 0x830   :  { %2507 = vrsqrt.f32 %v1925_v13 }
 0x831   :  { %2509 = vrsqrt.f32 %v1926_v51 }
 0x83a   :  { %v2508_v22 = vpop.eup %2507 }
 0x83b   :  { %v2510_v60 = vpop.eup %2509  ;;  %v1933_v17 = vmul.f32 0.044194173, %v2508_v22 }
 0x83c   :  { %v1934_v6 = vmul.f32 0.044194173, %v2510_v60 }
 0x83d   :  { %v1956_v45 = vmul.f32 %v1933_v17, %v3655_v7  ;;  %v1955_v14 = vmul.f32 %v1933_v17, %v3643_v21 }
 0x83e   :  { %v1957_v61 = vmul.f32 %v1934_v6, %v3648_v62 }
 0x85f   :  { %v1881_v20 = vpop.xlane.xlu1 %1880 }
 0x861   :  { %v1884_v15 = vpop.xlane.xlu0 %1883 }
 0x862   :  { %v1905_v33 = vadd.f32 %v1884_v15, %v1881_v20 }
 0x863   :  { %v1887_v2 = vpop.xlane.xlu1 %1886 }
 0x864   :  { %v1906_v12 = vrot.slane %v1905_v33, 4 }
 0x865   :  { %v1890_v39 = vpop.xlane.xlu0 %1889 }
 0x866   :  { %v1907_v42 = vadd.f32 %v1906_v12, %v1905_v33  ;;  %v1912_v26 = vadd.f32 %v1890_v39, %v1887_v2 }
 0x867   :  { %v1785_v5 = vpop.xlane.xlu1 %1784 }
 0x868   :  { %v1908_v48 = vrot.slane %v1907_v42, 2  ;;  %v1913_v57 = vrot.slane %v1912_v26, 4 }
 0x869   :  { %v1788_v46 = vpop.xlane.xlu0 %1787 }
 0x86a   :  { %v1909_v16 = vadd.f32 %v1908_v48, %v1907_v42  ;;  %v1914_v24 = vadd.f32 %v1913_v57, %v1912_v26  ;;  %v1807_v32 = vadd.f32 %v1788_v46, %v1785_v5 }
 0x86b   :  { %v1791_v23 = vpop.xlane.xlu1 %1790 }
 0x86c   :  { %v1910_v29 = vrot.slane %v1909_v16, 1  ;;  %v1915_v3 = vrot.slane %v1914_v24, 2  ;;  %v1808_v33 = vrot.slane %v1807_v32, 4 }
 0x86d   :  { %v1794_v4 = vpop.xlane.xlu0 %1793 }
 0x86e   :  { %v1911_v30 = vadd.f32 %v1910_v29, %v1909_v16  ;;  %v1916_v41 = vadd.f32 %v1915_v3, %v1914_v24  ;;  %v1814_v49 = vadd.f32 %v1794_v4, %v1791_v23  ;;  %v1809_v12 = vadd.f32 %v1808_v33, %v1807_v32 }
 0x86f   :  { %v1869_v52 = vpop.xlane.xlu1 %1868 }
 0x870   :  { %v1937_v53 = vadd.f32 1e-05, %v1911_v30  ;;  %v1917_v27 = vrot.slane %v1916_v41, 1  ;;  %v1815_v2 = vrot.slane %v1814_v49, 4  ;;  %v1810_v26 = vrot.slane %v1809_v12, 2 }
 0x871   :  { %v1872_v35 = vpop.xlane.xlu0 %1871 }
 0x872   :  { %v1941_v54 = vmul.f32 0.001953125, %v1937_v53  ;;  %v1918_v11 = vadd.f32 %v1917_v27, %v1916_v41  ;;  %v1891_v36 = vadd.f32 %v1872_v35, %v1869_v52  ;;  %v1816_v37 = vadd.f32 %v1815_v2, %v1814_v49 }
 0x873   :  { %v1875_v20 = vpop.xlane.xlu1 %1874  ;;  %v1811_v57 = vadd.f32 %v1810_v26, %v1809_v12 }
 0x874   :  { %2511 = vrsqrt.f32 %v1941_v54  ;;  %v1938_v0 = vadd.f32 1e-05, %v1918_v11  ;;  %v1892_v9 = vrot.slane %v1891_v36, 4  ;;  %v1817_v16 = vrot.slane %v1816_v37, 2 }
 0x875   :  { %v1812_v13 = vrot.slane %v1811_v57, 1 }
 0x876   :  { %v1942_v63 = vmul.f32 0.001953125, %v1938_v0  ;;  %v1893_v50 = vadd.f32 %v1892_v9, %v1891_v36  ;;  %v1818_v29 = vadd.f32 %v1817_v16, %v1816_v37 }
 0x877   :  { %v1813_v41 = vadd.f32 %v1812_v13, %v1811_v57 }
 0x878   :  { %2513 = vrsqrt.f32 %v1942_v63  ;;  %v1894_v39 = vrot.slane %v1893_v50, 2  ;;  %v1819_v51 = vrot.slane %v1818_v29, 1 }
 0x879   :  { %v1919_v54 = vadd.f32 1e-05, %v1813_v41 }
 0x87a   :  { %v1895_v28 = vadd.f32 %v1894_v39, %v1893_v50  ;;  %v1820_v11 = vadd.f32 %v1819_v51, %v1818_v29 }
 0x87b   :  { %v1923_v22 = vmul.f32 0.001953125, %v1919_v54 }
 0x87c   :  { %v1896_v24 = vrot.slane %v1895_v28, 1  ;;  %v1920_v60 = vadd.f32 1e-05, %v1820_v11 }
 0x87e   :  { %v2512_v18 = vpop.eup %2511  ;;  %v1897_v3 = vadd.f32 %v1896_v24, %v1895_v28 }
 0x87f   :  { %v1949_v47 = vmul.f32 0.044194173, %v2512_v18  ;;  %v1924_v18 = vmul.f32 0.001953125, %v1920_v60 }
 0x880   :  { %v1935_v53 = vadd.f32 1e-05, %v1897_v3 }
 0x881   :  { %v1964_v10 = vmul.f32 %v1949_v47, %v3655_v7  ;;  %v1963_v31 = vmul.f32 %v1949_v47, %v3643_v21  ;;  %v1958_v21 = vmul.f32 %v1934_v6, %v3660_v38 }
 0x882   :  { %v2514_v40 = vpop.eup %2513  ;;  %v1939_v0 = vmul.f32 0.001953125, %v1935_v53 }
 0x883   :  { %v1972_v55 = vsel %vm1644_vm10, %v1956_v45, %v1964_v10  ;;  %v1971_v44 = vsel %vm1644_vm10, %v1955_v14, %v1963_v31  ;;  %v1950_v59 = vmul.f32 0.044194173, %v2514_v40 }
 0x884   :  { %1981 = vrot.lane.b32.xlu0 %v1972_v55, %s2534_s18  ;;  %1979 = vrot.lane.b32.xlu1 %v1971_v44, %s2534_s18  ;;  %2515 = vrsqrt.f32 %v1939_v0 }
 0x885   :  { %v1965_v19 = vmul.f32 %v1950_v59, %v3648_v62  ;;  %v1966_v58 = vmul.f32 %v1950_v59, %v3660_v38  ;;  %v1878_v62 = vpop.xlane.xlu0 %1877  ;;  %2517 = vrsqrt.f32 %v1923_v22 }
 0x886   :  { %v1898_v15 = vadd.f32 %v1878_v62, %v1875_v20 }
 0x887   :  { %v1973_v7 = vsel %vm1644_vm10, %v1957_v61, %v1965_v19  ;;  %v1974_v25 = vsel %vm1644_vm10, %v1958_v21, %v1966_v58 }
 0x888   :  { %1983 = vrot.lane.b32.xlu1 %v1973_v7, %s2534_s18  ;;  %v1899_v38 = vrot.slane %v1898_v15, 4 }
 0x88a   :  { %v1900_v42 = vadd.f32 %v1899_v38, %v1898_v15 }
 0x88c   :  { %1985 = vrot.lane.b32.xlu1 %v1974_v25, %s2534_s18  ;;  %v1901_v48 = vrot.slane %v1900_v42, 2 }
 0x88e   :  { %v1902_v56 = vadd.f32 %v1901_v48, %v1900_v42  ;;  %v2516_v47 = vpop.eup %2515 }
 0x88f   :  { %v2518_v6 = vpop.eup %2517  ;;  %v1947_v45 = vmul.f32 0.044194173, %v2516_v47 }
 0x890   :  { %v1903_v30 = vrot.slane %v1902_v56, 1  ;;  %v1931_v14 = vmul.f32 0.044194173, %v2518_v6 }
 0x891   :  { %v1960_v40 = vmul.f32 %v1947_v45, %v3676_v1  ;;  %v1959_v55 = vmul.f32 %v1947_v45, %v3668_v34 }
 0x892   :  { %v1904_v27 = vadd.f32 %v1903_v30, %v1902_v56  ;;  %v1952_v59 = vmul.f32 %v1931_v14, %v3676_v1  ;;  %v1951_v61 = vmul.f32 %v1931_v14, %v3668_v34 }
 0x894   :  { %v1936_v63 = vadd.f32 1e-05, %v1904_v27  ;;  %v1968_v58 = vsel %vm1644_vm10, %v1952_v59, %v1960_v40  ;;  %v1967_v21 = vsel %vm1644_vm10, %v1951_v61, %v1959_v55 }
 0x896   :  { %v1940_v17 = vmul.f32 0.001953125, %v1936_v63 }
 0x898   :  { %2519 = vrsqrt.f32 %v1940_v17 }
 0x899   :  { %2521 = vrsqrt.f32 %v1924_v18 }
 0x8a2   :  { %v2520_v10 = vpop.eup %2519 }
 0x8a3   :  { %v2522_v31 = vpop.eup %2521  ;;  %v1948_v44 = vmul.f32 0.044194173, %v2520_v10 }
 0x8a4   :  { %v1932_v19 = vmul.f32 0.044194173, %v2522_v31 }
 0x8a5   :  { %v1961_v46 = vmul.f32 %v1948_v44, %v3684_v8  ;;  %v1962_v35 = vmul.f32 %v1948_v44, %v3692_v43 }
 0x8a6   :  { %v1953_v34 = vmul.f32 %v1932_v19, %v3684_v8  ;;  %v1954_v36 = vmul.f32 %v1932_v19, %v3692_v43 }
 0x8a8   :  { %v1969_v1 = vsel %vm1644_vm10, %v1953_v34, %v1961_v46  ;;  %v1970_v62 = vsel %vm1644_vm10, %v1954_v36, %v1962_v35 }
 0x8f6   :  { %v1982_v7 = vpop.permute.xlu0 %1981  ;;  %v1980_v25 = vpop.permute.xlu1 %1979 }
 0x8f7   :  { %v1992_v5 = vsel %vm83_vm0, %v1968_v58, %v1982_v7  ;;  %v1991_v4 = vsel %vm83_vm0, %v1967_v21, %v1980_v25 }
 0x8f8   :  { %1996 = vst [vmem:[%s3767_s3 + $0x8] sm:$0xff] %v1992_v5  ;;  %1995 = vst [vmem:[%s3767_s3] sm:$0xff] %v1991_v4 }
 0x8fa   :  { %v1984_v23 = vpop.permute.xlu1 %1983 }
 0x8fb   :  { %v1993_v52 = vsel %vm83_vm0, %v1969_v1, %v1984_v23 }
 0x8fc   :  { %1997 = vst [vmem:[%s3767_s3 + $0x10] sm:$0xff] %v1993_v52 }
 0x8fe   :  { %v1986_v32 = vpop.permute.xlu1 %1985 }
 0x8ff   :  { %v1994_v20 = vsel %vm83_vm0, %v1970_v62, %v1986_v32 }
 0x900   :  { %1998 = vst [vmem:[%s3767_s3 + $0x18] sm:$0xff] %v1994_v20 }

</bundles_post_ra>
